<compile_context>
chip_gen: v7x
topology: tpu7x:2x2x1
jax: 0.10.0
libtpu: 0.0.40
codegen_flags: <defaults>
</compile_context>

<pallas_src>
import functools
import math

import jax
import jax.numpy as jnp
from jax import lax
from jax.experimental import pallas as pl
from jax.experimental.pallas import tpu as pltpu


def _encoder_kernel(x_ref,
                    wqkv_ref, bqkv_ref, wo_ref, bo_ref,
                    g1_ref, be1_ref, g2_ref, be2_ref,
                    w1_ref, b1_ref, w2_ref, b2_ref,
                    o_ref,
                    *, nhead: int, num_layers: int, seq: int, batch: int):
    S, B, H = seq, batch, nhead
    M = S * B
    D = x_ref.shape[-1]
    hd = D // H
    G = H * B                                               # fused (head, batch) axis
    eps = 1e-5

    # Input arrives seq-first (S, B, D).  Re-order rows to (b, s) ONCE at entry
    # (per-batch ref reads + a leading-axis concat) so every reshape inside the
    # layer loop is a pure leading-dim regroup.
    x = jnp.concatenate([x_ref[:, b, :] for b in range(B)], axis=0)
    x = x.astype(jnp.float32)                               # (M, D), rows (b, s)

    # Resident matmul weights (bf16 operands for the MXU; f32 accumulation).
    wqkv = wqkv_ref[...]                                    # (D, 3D)  per-head [q|k|v]
    wo = wo_ref[...]                                        # (D, D)
    w1 = w1_ref[...]                                        # (D, F)
    w2 = w2_ref[...]                                        # (F, D)
    mm = wqkv.dtype                                         # matmul operand dtype

    # Biases / LayerNorm params stay (1, .): Mosaic handles row-replicated
    # operands, so no (M, .) broadcasts are pinned live across the layer loop.
    bqkv = bqkv_ref[...]
    bo = bo_ref[...]
    b1 = b1_ref[...]
    b2 = b2_ref[...]
    g1 = g1_ref[...]
    be1 = be1_ref[...]
    g2 = g2_ref[...]
    be2 = be2_ref[...]

    def layer_norm(v, g, b):
        mu = jnp.mean(v, axis=-1, keepdims=True)
        var = jnp.mean((v - mu) * (v - mu), axis=-1, keepdims=True)
        return (v - mu) * lax.rsqrt(var + eps) * g + b

    # TODO(synk): nn.GELU is exact erf in PyTorch; tanh approximation used here
    # (Mosaic-safe, EUP slot, review-sanctioned). ~1e-3 relative difference.
    k0 = 0.7978845608028654        # sqrt(2/pi)
    k1 = 0.044715

    def layer_body(_, x):
        # --- self-attention block (pre-norm) ---
        h = layer_norm(x, g1, be1)
        # Fused QKV projection; 1/sqrt(hd) is pre-folded into the Q columns.
        qkv = jnp.dot(h.astype(mm), wqkv,
                      preferred_element_type=jnp.float32) + bqkv      # (M, 3D)
        # Per-head [q|k|v] chunks -> fused (head, batch) leading batch axis.
        t = jnp.stack([qkv[:, i * 3 * hd:(i + 1) * 3 * hd] for i in range(H)],
                      axis=0)                                          # (H, M, 3hd)
        t = t.reshape(G, S, 3 * hd)                                    # (H*B, S, 3hd)
        q = t[..., 0:hd]                                               # pre-scaled
        k = t[..., hd:2 * hd]
        v = t[..., 2 * hd:3 * hd]

        # Batched QK^T and PV over the fused (head*batch) leading axis.
        s = lax.dot_general(q.astype(mm), k.astype(mm),
                            (((2,), (2,)), ((0,), (0,))),
                            preferred_element_type=jnp.float32)        # (G, S, S)
        s = s - jnp.max(s, axis=-1, keepdims=True)
        p = jnp.exp(s)
        p = p * pl.reciprocal(jnp.sum(p, axis=-1, keepdims=True), approx=True)
        ctx = lax.dot_general(p.astype(mm), v.astype(mm),
                              (((2,), (1,)), ((0,), (0,))),
                              preferred_element_type=jnp.float32)      # (G, S, hd)

        # Merge heads back into lanes (leading split + one lane concat), then a
        # single (M, D) x (D, D) output projection instead of G tiny batched
        # matmuls + an H-way sum.
        ctx_h = ctx.reshape(H, M, hd)                                  # rows (b, s)
        merged = jnp.concatenate([ctx_h[i] for i in range(H)], axis=-1)  # (M, D)
        attn = jnp.dot(merged.astype(mm), wo,
                       preferred_element_type=jnp.float32) + bo
        x = x + attn                                  # dropout1 = identity (inference)

        # --- feed-forward block (pre-norm) ---
        h2 = layer_norm(x, g2, be2)
        f = jnp.dot(h2.astype(mm), w1, preferred_element_type=jnp.float32) + b1
        f = 0.5 * f * (1.0 + jnp.tanh(k0 * (f + k1 * f * f * f)))      # tanh GELU
        f = jnp.dot(f.astype(mm), w2, preferred_element_type=jnp.float32) + b2
        return x + f                                  # dropout2 = identity (inference)

    # Shared weights across layers; unrolled so layer i's epilogue can overlap
    # layer i+1's prologue.
    x = lax.fori_loop(0, num_layers, layer_body, x, unroll=True)

    # Write back in the original (S, B, D) layout with per-batch slice stores.
    y = x.reshape(B, S, D)
    for b in range(B):
        o_ref[:, b, :] = y[b].astype(o_ref.dtype)


def init_params(key, d_model, nhead, dim_feedforward):
    """Deterministic synthetic parameters (shapes mirror the PyTorch module).
    Weights are stored pre-transposed so the kernel computes x @ W."""
    ks = jax.random.split(key, 8)
    sc = 0.02
    wq = sc * jax.random.normal(ks[0], (d_model, d_model), jnp.float32)
    wk = sc * jax.random.normal(ks[1], (d_model, d_model), jnp.float32)
    wv = sc * jax.random.normal(ks[2], (d_model, d_model), jnp.float32)
    bq = jnp.zeros((1, d_model), jnp.float32)
    bk = jnp.zeros((1, d_model), jnp.float32)
    bv = jnp.zeros((1, d_model), jnp.float32)
    wo = sc * jax.random.normal(ks[3], (d_model, d_model), jnp.float32)
    bo = jnp.zeros((1, d_model), jnp.float32)
    g1 = jnp.ones((1, d_model), jnp.float32)
    be1 = jnp.zeros((1, d_model), jnp.float32)
    g2 = jnp.ones((1, d_model), jnp.float32)
    be2 = jnp.zeros((1, d_model), jnp.float32)
    w1 = sc * jax.random.normal(ks[4], (d_model, dim_feedforward), jnp.float32)
    b1 = sc * jax.random.normal(ks[5], (1, dim_feedforward), jnp.float32)
    w2 = sc * jax.random.normal(ks[6], (dim_feedforward, d_model), jnp.float32)
    b2 = sc * jax.random.normal(ks[7], (1, d_model), jnp.float32)
    return (wq, wk, wv, bq, bk, bv, wo, bo, g1, be1, g2, be2, w1, b1, w2, b2)


def _prepare_params(params, nhead, matmul_dtype):
    """Fuse QKV with per-head [q|k|v] column grouping, fold the 1/sqrt(hd)
    attention scale into the Q columns/bias, cast matmul weights to the MXU
    operand dtype.  Runs in plain JAX outside the kernel (one-time)."""
    (wq, wk, wv, bq, bk, bv, wo, bo, g1, be1, g2, be2, w1, b1, w2, b2) = params
    D = wq.shape[0]
    hd = D // nhead
    scale = 1.0 / math.sqrt(float(hd))
    wq = wq * scale
    bq = bq * scale
    w_cols, b_cols = [], []
    for h in range(nhead):
        sl = slice(h * hd, (h + 1) * hd)
        w_cols += [wq[:, sl], wk[:, sl], wv[:, sl]]
        b_cols += [bq[:, sl], bk[:, sl], bv[:, sl]]
    wqkv = jnp.concatenate(w_cols, axis=1).astype(matmul_dtype)   # (D, 3D)
    bqkv = jnp.concatenate(b_cols, axis=1)                        # (1, 3D)  f32
    return (wqkv, bqkv, wo.astype(matmul_dtype), bo, g1, be1, g2, be2,
            w1.astype(matmul_dtype), b1, w2.astype(matmul_dtype), b2)


def transformer_model(src, params, *, nhead, num_layers,
                      matmul_dtype=jnp.bfloat16):
    """src: (seq, batch, d_model) float32 — PyTorch seq-first layout, consumed
    directly (no wrapper transposes).  Single fused block (grid=(1,))."""
    S, B, D = src.shape
    assert D % nhead == 0
    kparams = _prepare_params(params, nhead, matmul_dtype)

    def full_spec(arr):
        zeros = tuple(0 for _ in arr.shape)
        return pl.BlockSpec(arr.shape, lambda i, _z=zeros: _z)

    in_specs = [pl.BlockSpec((S, B, D), lambda i: (0, 0, 0))] + \
               [full_spec(p) for p in kparams]

    kernel = functools.partial(_encoder_kernel, nhead=nhead,
                               num_layers=num_layers, seq=S, batch=B)
    out = pl.pallas_call(
        kernel,
        out_shape=jax.ShapeDtypeStruct((S, B, D), jnp.float32),
        grid_spec=pltpu.PrefetchScalarGridSpec(
            num_scalar_prefetch=0,
            grid=(1,),
            in_specs=in_specs,
            out_specs=pl.BlockSpec((S, B, D), lambda i: (0, 0, 0)),
        ),
        compiler_params=pltpu.CompilerParams(
            dimension_semantics=("arbitrary",),
            vmem_limit_bytes=32 * 1024 * 1024),
    )(src, *kparams)
    return out


if __name__ == "__main__":
    # TODO(synk): nn.Dropout layers are treated as identity (inference semantics).
    d_model = 32
    nhead = 4
    dim_feedforward = 64
    num_layers = 2
    seq, batch = 8, 2

    key = jax.random.PRNGKey(0)
    k_x, k_p = jax.random.split(key)
    src = jax.random.normal(k_x, (seq, batch, d_model), jnp.float32)
    params = init_params(k_p, d_model, nhead, dim_feedforward)

    out = transformer_model(src, params, nhead=nhead, num_layers=num_layers)
    jax.block_until_ready(out)
    assert out.shape == (seq, batch, d_model)
    print("KERNEL_OK")
</pallas_src>

<mosaic_0001>
module attributes {stable_mosaic.version = 11 : i64} {
  func.func @_encoder_kernel(%arg0: i32, %arg1: memref<8x2x32xf32, #tpu.memory_space<vmem>>, %arg2: memref<32x96xbf16, #tpu.memory_space<vmem>>, %arg3: memref<1x96xf32, #tpu.memory_space<vmem>>, %arg4: memref<32x32xbf16, #tpu.memory_space<vmem>>, %arg5: memref<1x32xf32, #tpu.memory_space<vmem>>, %arg6: memref<1x32xf32, #tpu.memory_space<vmem>>, %arg7: memref<1x32xf32, #tpu.memory_space<vmem>>, %arg8: memref<1x32xf32, #tpu.memory_space<vmem>>, %arg9: memref<1x32xf32, #tpu.memory_space<vmem>>, %arg10: memref<32x64xbf16, #tpu.memory_space<vmem>>, %arg11: memref<1x64xf32, #tpu.memory_space<vmem>>, %arg12: memref<64x32xbf16, #tpu.memory_space<vmem>>, %arg13: memref<1x32xf32, #tpu.memory_space<vmem>>, %arg14: memref<8x2x32xf32, #tpu.memory_space<vmem>>) attributes {dimension_semantics = [#tpu.dimension_semantics<arbitrary>], iteration_bounds = array<i64: 1>, scalar_prefetch = 0 : i64, scratch_operands = 0 : i64, tpu.core_type = #tpu.core_type<tc>, window_params = [{pipeline_mode = #tpu.pipeline_mode<synchronous>, transform_indices = @transform_0, window_bounds = array<i64: 8, 2, 32>}, {pipeline_mode = #tpu.pipeline_mode<synchronous>, transform_indices = @transform_1, window_bounds = array<i64: 32, 96>}, {pipeline_mode = #tpu.pipeline_mode<synchronous>, transform_indices = @transform_2, window_bounds = array<i64: 1, 96>}, {pipeline_mode = #tpu.pipeline_mode<synchronous>, transform_indices = @transform_3, window_bounds = array<i64: 32, 32>}, {pipeline_mode = #tpu.pipeline_mode<synchronous>, transform_indices = @transform_4, window_bounds = array<i64: 1, 32>}, {pipeline_mode = #tpu.pipeline_mode<synchronous>, transform_indices = @transform_5, window_bounds = array<i64: 1, 32>}, {pipeline_mode = #tpu.pipeline_mode<synchronous>, transform_indices = @transform_6, window_bounds = array<i64: 1, 32>}, {pipeline_mode = #tpu.pipeline_mode<synchronous>, transform_indices = @transform_7, window_bounds = array<i64: 1, 32>}, {pipeline_mode = #tpu.pipeline_mode<synchronous>, transform_indices = @transform_8, window_bounds = array<i64: 1, 32>}, {pipeline_mode = #tpu.pipeline_mode<synchronous>, transform_indices = @transform_9, window_bounds = array<i64: 32, 64>}, {pipeline_mode = #tpu.pipeline_mode<synchronous>, transform_indices = @transform_10, window_bounds = array<i64: 1, 64>}, {pipeline_mode = #tpu.pipeline_mode<synchronous>, transform_indices = @transform_11, window_bounds = array<i64: 64, 32>}, {pipeline_mode = #tpu.pipeline_mode<synchronous>, transform_indices = @transform_12, window_bounds = array<i64: 1, 32>}, {pipeline_mode = #tpu.pipeline_mode<synchronous>, transform_indices = @transform_13, window_bounds = array<i64: 8, 2, 32>}]} {
    %c0 = arith.constant 0 : index
    %c0_0 = arith.constant 0 : index
    %c0_1 = arith.constant 0 : index
    %0 = vector.load %arg1[%c0, %c0_0, %c0_1] : memref<8x2x32xf32, #tpu.memory_space<vmem>>, vector<8x1x32xf32>
    %1 = vector.shape_cast %0 : vector<8x1x32xf32> to vector<8x32xf32>
    %c0_2 = arith.constant 0 : index
    %c1 = arith.constant 1 : index
    %c0_3 = arith.constant 0 : index
    %2 = vector.load %arg1[%c0_2, %c1, %c0_3] : memref<8x2x32xf32, #tpu.memory_space<vmem>>, vector<8x1x32xf32>
    %3 = vector.shape_cast %2 : vector<8x1x32xf32> to vector<8x32xf32>
    %4 = tpu.concatenate %1, %3 in 0 : vector<8x32xf32>, vector<8x32xf32> -> vector<16x32xf32>
    %c0_4 = arith.constant 0 : index
    %c0_5 = arith.constant 0 : index
    %5 = vector.load %arg2[%c0_4, %c0_5] : memref<32x96xbf16, #tpu.memory_space<vmem>>, vector<32x96xbf16>
    %c0_6 = arith.constant 0 : index
    %c0_7 = arith.constant 0 : index
    %6 = vector.load %arg4[%c0_6, %c0_7] : memref<32x32xbf16, #tpu.memory_space<vmem>>, vector<32x32xbf16>
    %c0_8 = arith.constant 0 : index
    %c0_9 = arith.constant 0 : index
    %7 = vector.load %arg10[%c0_8, %c0_9] : memref<32x64xbf16, #tpu.memory_space<vmem>>, vector<32x64xbf16>
    %c0_10 = arith.constant 0 : index
    %c0_11 = arith.constant 0 : index
    %8 = vector.load %arg12[%c0_10, %c0_11] : memref<64x32xbf16, #tpu.memory_space<vmem>>, vector<64x32xbf16>
    %c0_12 = arith.constant 0 : index
    %c0_13 = arith.constant 0 : index
    %9 = vector.load %arg3[%c0_12, %c0_13] : memref<1x96xf32, #tpu.memory_space<vmem>>, vector<1x96xf32>
    %c0_14 = arith.constant 0 : index
    %c0_15 = arith.constant 0 : index
    %10 = vector.load %arg5[%c0_14, %c0_15] : memref<1x32xf32, #tpu.memory_space<vmem>>, vector<1x32xf32>
    %c0_16 = arith.constant 0 : index
    %c0_17 = arith.constant 0 : index
    %11 = vector.load %arg11[%c0_16, %c0_17] : memref<1x64xf32, #tpu.memory_space<vmem>>, vector<1x64xf32>
    %c0_18 = arith.constant 0 : index
    %c0_19 = arith.constant 0 : index
    %12 = vector.load %arg13[%c0_18, %c0_19] : memref<1x32xf32, #tpu.memory_space<vmem>>, vector<1x32xf32>
    %c0_20 = arith.constant 0 : index
    %c0_21 = arith.constant 0 : index
    %13 = vector.load %arg6[%c0_20, %c0_21] : memref<1x32xf32, #tpu.memory_space<vmem>>, vector<1x32xf32>
    %c0_22 = arith.constant 0 : index
    %c0_23 = arith.constant 0 : index
    %14 = vector.load %arg7[%c0_22, %c0_23] : memref<1x32xf32, #tpu.memory_space<vmem>>, vector<1x32xf32>
    %c0_24 = arith.constant 0 : index
    %c0_25 = arith.constant 0 : index
    %15 = vector.load %arg8[%c0_24, %c0_25] : memref<1x32xf32, #tpu.memory_space<vmem>>, vector<1x32xf32>
    %c0_26 = arith.constant 0 : index
    %c0_27 = arith.constant 0 : index
    %16 = vector.load %arg9[%c0_26, %c0_27] : memref<1x32xf32, #tpu.memory_space<vmem>>, vector<1x32xf32>
    %c0_i32 = arith.constant 0 : i32
    %cst = arith.constant dense<0.000000e+00> : vector<16xf32>
    %17 = vector.multi_reduction <add>, %4, %cst [1] : vector<16x32xf32> to vector<16xf32>
    %18 = vector.shape_cast %17 : vector<16xf32> to vector<16x1xf32>
    %cst_28 = arith.constant 3.200000e+01 : f32
    %19 = vector.broadcast %cst_28 : f32 to vector<16x1xf32>
    %20 = arith.divf %18, %19 : vector<16x1xf32>
    %21 = vector.broadcast %20 : vector<16x1xf32> to vector<16x32xf32>
    %22 = arith.subf %4, %21 : vector<16x32xf32>
    %23 = vector.broadcast %20 : vector<16x1xf32> to vector<16x32xf32>
    %24 = arith.subf %4, %23 : vector<16x32xf32>
    %25 = arith.mulf %22, %24 : vector<16x32xf32>
    %cst_29 = arith.constant dense<0.000000e+00> : vector<16xf32>
    %26 = vector.multi_reduction <add>, %25, %cst_29 [1] : vector<16x32xf32> to vector<16xf32>
    %27 = vector.shape_cast %26 : vector<16xf32> to vector<16x1xf32>
    %cst_30 = arith.constant 3.200000e+01 : f32
    %28 = vector.broadcast %cst_30 : f32 to vector<16x1xf32>
    %29 = arith.divf %27, %28 : vector<16x1xf32>
    %30 = vector.broadcast %20 : vector<16x1xf32> to vector<16x32xf32>
    %31 = arith.subf %4, %30 : vector<16x32xf32>
    %cst_31 = arith.constant 9.99999974E-6 : f32
    %32 = vector.broadcast %cst_31 : f32 to vector<16x1xf32>
    %33 = arith.addf %29, %32 : vector<16x1xf32>
    %34 = math.rsqrt %33 : vector<16x1xf32>
    %35 = vector.broadcast %34 : vector<16x1xf32> to vector<16x32xf32>
    %36 = arith.mulf %31, %35 : vector<16x32xf32>
    %37 = vector.broadcast %13 : vector<1x32xf32> to vector<16x32xf32>
    %38 = arith.mulf %36, %37 : vector<16x32xf32>
    %39 = vector.broadcast %14 : vector<1x32xf32> to vector<16x32xf32>
    %40 = arith.addf %38, %39 : vector<16x32xf32>
    %41 = arith.truncf %40 : vector<16x32xf32> to vector<16x32xbf16>
    %cst_32 = arith.constant dense<0.000000e+00> : vector<16x96xf32>
    %42 = tpu.matmul %41, %5, %cst_32 {dimension_numbers = #tpu.dot_dimension_numbers<[1], [0], [0], [1], [0, 0, 1, 1], [], []>} : vector<16x32xbf16>, vector<32x96xbf16>, vector<16x96xf32> -> vector<16x96xf32>
    %43 = vector.broadcast %9 : vector<1x96xf32> to vector<16x96xf32>
    %44 = arith.addf %42, %43 : vector<16x96xf32>
    %45 = vector.extract_strided_slice %44 {offsets = [0, 0], sizes = [16, 24], strides = [1, 1]} : vector<16x96xf32> to vector<16x24xf32>
    %46 = vector.extract_strided_slice %44 {offsets = [0, 24], sizes = [16, 24], strides = [1, 1]} : vector<16x96xf32> to vector<16x24xf32>
    %47 = vector.extract_strided_slice %44 {offsets = [0, 48], sizes = [16, 24], strides = [1, 1]} : vector<16x96xf32> to vector<16x24xf32>
    %48 = vector.extract_strided_slice %44 {offsets = [0, 72], sizes = [16, 24], strides = [1, 1]} : vector<16x96xf32> to vector<16x24xf32>
    %49 = vector.shape_cast %45 : vector<16x24xf32> to vector<1x16x24xf32>
    %50 = vector.shape_cast %46 : vector<16x24xf32> to vector<1x16x24xf32>
    %51 = vector.shape_cast %47 : vector<16x24xf32> to vector<1x16x24xf32>
    %52 = vector.shape_cast %48 : vector<16x24xf32> to vector<1x16x24xf32>
    %53 = tpu.concatenate %49, %50, %51, %52 in 0 : vector<1x16x24xf32>, vector<1x16x24xf32>, vector<1x16x24xf32>, vector<1x16x24xf32> -> vector<4x16x24xf32>
    %54 = vector.shape_cast %53 : vector<4x16x24xf32> to vector<8x8x24xf32>
    %55 = vector.extract_strided_slice %54 {offsets = [0, 0, 0], sizes = [8, 8, 8], strides = [1, 1, 1]} : vector<8x8x24xf32> to vector<8x8x8xf32>
    %56 = vector.extract_strided_slice %54 {offsets = [0, 0, 8], sizes = [8, 8, 8], strides = [1, 1, 1]} : vector<8x8x24xf32> to vector<8x8x8xf32>
    %57 = vector.extract_strided_slice %54 {offsets = [0, 0, 16], sizes = [8, 8, 8], strides = [1, 1, 1]} : vector<8x8x24xf32> to vector<8x8x8xf32>
    %58 = arith.truncf %55 : vector<8x8x8xf32> to vector<8x8x8xbf16>
    %59 = arith.truncf %56 : vector<8x8x8xf32> to vector<8x8x8xbf16>
    %cst_33 = arith.constant dense<0.000000e+00> : vector<8x8x8xf32>
    %60 = tpu.matmul %58, %59, %cst_33 {dimension_numbers = #tpu.dot_dimension_numbers<[2], [2], [1], [1], [0, 0, 0, 1, 1, 1], [0], [0]>} : vector<8x8x8xbf16>, vector<8x8x8xbf16>, vector<8x8x8xf32> -> vector<8x8x8xf32>
    %cst_34 = arith.constant dense<0xFF800000> : vector<8x8xf32>
    %61 = vector.multi_reduction <maximumf>, %60, %cst_34 [2] : vector<8x8x8xf32> to vector<8x8xf32>
    %62 = vector.shape_cast %61 : vector<8x8xf32> to vector<8x8x1xf32>
    %63 = vector.broadcast %62 : vector<8x8x1xf32> to vector<8x8x8xf32>
    %64 = arith.subf %60, %63 : vector<8x8x8xf32>
    %65 = math.exp %64 : vector<8x8x8xf32>
    %cst_35 = arith.constant dense<0.000000e+00> : vector<8x8xf32>
    %66 = vector.multi_reduction <add>, %65, %cst_35 [2] : vector<8x8x8xf32> to vector<8x8xf32>
    %67 = vector.shape_cast %66 : vector<8x8xf32> to vector<8x8x1xf32>
    %68 = tpu.reciprocal %67 {approx = true} : vector<8x8x1xf32> -> vector<8x8x1xf32>
    %69 = vector.broadcast %68 : vector<8x8x1xf32> to vector<8x8x8xf32>
    %70 = arith.mulf %65, %69 : vector<8x8x8xf32>
    %71 = arith.truncf %70 : vector<8x8x8xf32> to vector<8x8x8xbf16>
    %72 = arith.truncf %57 : vector<8x8x8xf32> to vector<8x8x8xbf16>
    %cst_36 = arith.constant dense<0.000000e+00> : vector<8x8x8xf32>
    %73 = tpu.matmul %71, %72, %cst_36 {dimension_numbers = #tpu.dot_dimension_numbers<[2], [1], [1], [2], [0, 0, 0, 1, 1, 2], [0], [0]>} : vector<8x8x8xbf16>, vector<8x8x8xbf16>, vector<8x8x8xf32> -> vector<8x8x8xf32>
    %74 = vector.shape_cast %73 : vector<8x8x8xf32> to vector<4x16x8xf32>
    %75 = vector.extract_strided_slice %74 {offsets = [0, 0, 0], sizes = [1, 16, 8], strides = [1, 1, 1]} : vector<4x16x8xf32> to vector<1x16x8xf32>
    %76 = vector.shape_cast %75 : vector<1x16x8xf32> to vector<16x8xf32>
    %77 = vector.extract_strided_slice %74 {offsets = [1, 0, 0], sizes = [1, 16, 8], strides = [1, 1, 1]} : vector<4x16x8xf32> to vector<1x16x8xf32>
    %78 = vector.shape_cast %77 : vector<1x16x8xf32> to vector<16x8xf32>
    %79 = vector.extract_strided_slice %74 {offsets = [2, 0, 0], sizes = [1, 16, 8], strides = [1, 1, 1]} : vector<4x16x8xf32> to vector<1x16x8xf32>
    %80 = vector.shape_cast %79 : vector<1x16x8xf32> to vector<16x8xf32>
    %81 = vector.extract_strided_slice %74 {offsets = [3, 0, 0], sizes = [1, 16, 8], strides = [1, 1, 1]} : vector<4x16x8xf32> to vector<1x16x8xf32>
    %82 = vector.shape_cast %81 : vector<1x16x8xf32> to vector<16x8xf32>
    %83 = tpu.concatenate %76, %78, %80, %82 in 1 : vector<16x8xf32>, vector<16x8xf32>, vector<16x8xf32>, vector<16x8xf32> -> vector<16x32xf32>
    %84 = arith.truncf %83 : vector<16x32xf32> to vector<16x32xbf16>
    %cst_37 = arith.constant dense<0.000000e+00> : vector<16x32xf32>
    %85 = tpu.matmul %84, %6, %cst_37 {dimension_numbers = #tpu.dot_dimension_numbers<[1], [0], [0], [1], [0, 0, 1, 1], [], []>} : vector<16x32xbf16>, vector<32x32xbf16>, vector<16x32xf32> -> vector<16x32xf32>
    %86 = vector.broadcast %10 : vector<1x32xf32> to vector<16x32xf32>
    %87 = arith.addf %85, %86 : vector<16x32xf32>
    %88 = arith.addf %4, %87 : vector<16x32xf32>
    %cst_38 = arith.constant dense<0.000000e+00> : vector<16xf32>
    %89 = vector.multi_reduction <add>, %88, %cst_38 [1] : vector<16x32xf32> to vector<16xf32>
    %90 = vector.shape_cast %89 : vector<16xf32> to vector<16x1xf32>
    %cst_39 = arith.constant 3.200000e+01 : f32
    %91 = vector.broadcast %cst_39 : f32 to vector<16x1xf32>
    %92 = arith.divf %90, %91 : vector<16x1xf32>
    %93 = vector.broadcast %92 : vector<16x1xf32> to vector<16x32xf32>
    %94 = arith.subf %88, %93 : vector<16x32xf32>
    %95 = vector.broadcast %92 : vector<16x1xf32> to vector<16x32xf32>
    %96 = arith.subf %88, %95 : vector<16x32xf32>
    %97 = arith.mulf %94, %96 : vector<16x32xf32>
    %cst_40 = arith.constant dense<0.000000e+00> : vector<16xf32>
    %98 = vector.multi_reduction <add>, %97, %cst_40 [1] : vector<16x32xf32> to vector<16xf32>
    %99 = vector.shape_cast %98 : vector<16xf32> to vector<16x1xf32>
    %cst_41 = arith.constant 3.200000e+01 : f32
    %100 = vector.broadcast %cst_41 : f32 to vector<16x1xf32>
    %101 = arith.divf %99, %100 : vector<16x1xf32>
    %102 = vector.broadcast %92 : vector<16x1xf32> to vector<16x32xf32>
    %103 = arith.subf %88, %102 : vector<16x32xf32>
    %cst_42 = arith.constant 9.99999974E-6 : f32
    %104 = vector.broadcast %cst_42 : f32 to vector<16x1xf32>
    %105 = arith.addf %101, %104 : vector<16x1xf32>
    %106 = math.rsqrt %105 : vector<16x1xf32>
    %107 = vector.broadcast %106 : vector<16x1xf32> to vector<16x32xf32>
    %108 = arith.mulf %103, %107 : vector<16x32xf32>
    %109 = vector.broadcast %15 : vector<1x32xf32> to vector<16x32xf32>
    %110 = arith.mulf %108, %109 : vector<16x32xf32>
    %111 = vector.broadcast %16 : vector<1x32xf32> to vector<16x32xf32>
    %112 = arith.addf %110, %111 : vector<16x32xf32>
    %113 = arith.truncf %112 : vector<16x32xf32> to vector<16x32xbf16>
    %cst_43 = arith.constant dense<0.000000e+00> : vector<16x64xf32>
    %114 = tpu.matmul %113, %7, %cst_43 {dimension_numbers = #tpu.dot_dimension_numbers<[1], [0], [0], [1], [0, 0, 1, 1], [], []>} : vector<16x32xbf16>, vector<32x64xbf16>, vector<16x64xf32> -> vector<16x64xf32>
    %115 = vector.broadcast %11 : vector<1x64xf32> to vector<16x64xf32>
    %116 = arith.addf %114, %115 : vector<16x64xf32>
    %cst_44 = arith.constant 5.000000e-01 : f32
    %117 = vector.broadcast %cst_44 : f32 to vector<16x64xf32>
    %118 = arith.mulf %117, %116 : vector<16x64xf32>
    %cst_45 = arith.constant 4.471500e-02 : f32
    %119 = vector.broadcast %cst_45 : f32 to vector<16x64xf32>
    %120 = arith.mulf %119, %116 : vector<16x64xf32>
    %121 = arith.mulf %120, %116 : vector<16x64xf32>
    %122 = arith.mulf %121, %116 : vector<16x64xf32>
    %123 = arith.addf %116, %122 : vector<16x64xf32>
    %cst_46 = arith.constant 0.797884583 : f32
    %124 = vector.broadcast %cst_46 : f32 to vector<16x64xf32>
    %125 = arith.mulf %124, %123 : vector<16x64xf32>
    %126 = math.tanh %125 : vector<16x64xf32>
    %cst_47 = arith.constant 1.000000e+00 : f32
    %127 = vector.broadcast %cst_47 : f32 to vector<16x64xf32>
    %128 = arith.addf %127, %126 : vector<16x64xf32>
    %129 = arith.mulf %118, %128 : vector<16x64xf32>
    %130 = arith.truncf %129 : vector<16x64xf32> to vector<16x64xbf16>
    %cst_48 = arith.constant dense<0.000000e+00> : vector<16x32xf32>
    %131 = tpu.matmul %130, %8, %cst_48 {dimension_numbers = #tpu.dot_dimension_numbers<[1], [0], [0], [1], [0, 0, 1, 1], [], []>} : vector<16x64xbf16>, vector<64x32xbf16>, vector<16x32xf32> -> vector<16x32xf32>
    %132 = vector.broadcast %12 : vector<1x32xf32> to vector<16x32xf32>
    %133 = arith.addf %131, %132 : vector<16x32xf32>
    %134 = arith.addf %88, %133 : vector<16x32xf32>
    %c1_i32 = arith.constant 1 : i32
    %cst_49 = arith.constant dense<0.000000e+00> : vector<16xf32>
    %135 = vector.multi_reduction <add>, %134, %cst_49 [1] : vector<16x32xf32> to vector<16xf32>
    %136 = vector.shape_cast %135 : vector<16xf32> to vector<16x1xf32>
    %cst_50 = arith.constant 3.200000e+01 : f32
    %137 = vector.broadcast %cst_50 : f32 to vector<16x1xf32>
    %138 = arith.divf %136, %137 : vector<16x1xf32>
    %139 = vector.broadcast %138 : vector<16x1xf32> to vector<16x32xf32>
    %140 = arith.subf %134, %139 : vector<16x32xf32>
    %141 = vector.broadcast %138 : vector<16x1xf32> to vector<16x32xf32>
    %142 = arith.subf %134, %141 : vector<16x32xf32>
    %143 = arith.mulf %140, %142 : vector<16x32xf32>
    %cst_51 = arith.constant dense<0.000000e+00> : vector<16xf32>
    %144 = vector.multi_reduction <add>, %143, %cst_51 [1] : vector<16x32xf32> to vector<16xf32>
    %145 = vector.shape_cast %144 : vector<16xf32> to vector<16x1xf32>
    %cst_52 = arith.constant 3.200000e+01 : f32
    %146 = vector.broadcast %cst_52 : f32 to vector<16x1xf32>
    %147 = arith.divf %145, %146 : vector<16x1xf32>
    %148 = vector.broadcast %138 : vector<16x1xf32> to vector<16x32xf32>
    %149 = arith.subf %134, %148 : vector<16x32xf32>
    %cst_53 = arith.constant 9.99999974E-6 : f32
    %150 = vector.broadcast %cst_53 : f32 to vector<16x1xf32>
    %151 = arith.addf %147, %150 : vector<16x1xf32>
    %152 = math.rsqrt %151 : vector<16x1xf32>
    %153 = vector.broadcast %152 : vector<16x1xf32> to vector<16x32xf32>
    %154 = arith.mulf %149, %153 : vector<16x32xf32>
    %155 = vector.broadcast %13 : vector<1x32xf32> to vector<16x32xf32>
    %156 = arith.mulf %154, %155 : vector<16x32xf32>
    %157 = vector.broadcast %14 : vector<1x32xf32> to vector<16x32xf32>
    %158 = arith.addf %156, %157 : vector<16x32xf32>
    %159 = arith.truncf %158 : vector<16x32xf32> to vector<16x32xbf16>
    %cst_54 = arith.constant dense<0.000000e+00> : vector<16x96xf32>
    %160 = tpu.matmul %159, %5, %cst_54 {dimension_numbers = #tpu.dot_dimension_numbers<[1], [0], [0], [1], [0, 0, 1, 1], [], []>} : vector<16x32xbf16>, vector<32x96xbf16>, vector<16x96xf32> -> vector<16x96xf32>
    %161 = vector.broadcast %9 : vector<1x96xf32> to vector<16x96xf32>
    %162 = arith.addf %160, %161 : vector<16x96xf32>
    %163 = vector.extract_strided_slice %162 {offsets = [0, 0], sizes = [16, 24], strides = [1, 1]} : vector<16x96xf32> to vector<16x24xf32>
    %164 = vector.extract_strided_slice %162 {offsets = [0, 24], sizes = [16, 24], strides = [1, 1]} : vector<16x96xf32> to vector<16x24xf32>
    %165 = vector.extract_strided_slice %162 {offsets = [0, 48], sizes = [16, 24], strides = [1, 1]} : vector<16x96xf32> to vector<16x24xf32>
    %166 = vector.extract_strided_slice %162 {offsets = [0, 72], sizes = [16, 24], strides = [1, 1]} : vector<16x96xf32> to vector<16x24xf32>
    %167 = vector.shape_cast %163 : vector<16x24xf32> to vector<1x16x24xf32>
    %168 = vector.shape_cast %164 : vector<16x24xf32> to vector<1x16x24xf32>
    %169 = vector.shape_cast %165 : vector<16x24xf32> to vector<1x16x24xf32>
    %170 = vector.shape_cast %166 : vector<16x24xf32> to vector<1x16x24xf32>
    %171 = tpu.concatenate %167, %168, %169, %170 in 0 : vector<1x16x24xf32>, vector<1x16x24xf32>, vector<1x16x24xf32>, vector<1x16x24xf32> -> vector<4x16x24xf32>
    %172 = vector.shape_cast %171 : vector<4x16x24xf32> to vector<8x8x24xf32>
    %173 = vector.extract_strided_slice %172 {offsets = [0, 0, 0], sizes = [8, 8, 8], strides = [1, 1, 1]} : vector<8x8x24xf32> to vector<8x8x8xf32>
    %174 = vector.extract_strided_slice %172 {offsets = [0, 0, 8], sizes = [8, 8, 8], strides = [1, 1, 1]} : vector<8x8x24xf32> to vector<8x8x8xf32>
    %175 = vector.extract_strided_slice %172 {offsets = [0, 0, 16], sizes = [8, 8, 8], strides = [1, 1, 1]} : vector<8x8x24xf32> to vector<8x8x8xf32>
    %176 = arith.truncf %173 : vector<8x8x8xf32> to vector<8x8x8xbf16>
    %177 = arith.truncf %174 : vector<8x8x8xf32> to vector<8x8x8xbf16>
    %cst_55 = arith.constant dense<0.000000e+00> : vector<8x8x8xf32>
    %178 = tpu.matmul %176, %177, %cst_55 {dimension_numbers = #tpu.dot_dimension_numbers<[2], [2], [1], [1], [0, 0, 0, 1, 1, 1], [0], [0]>} : vector<8x8x8xbf16>, vector<8x8x8xbf16>, vector<8x8x8xf32> -> vector<8x8x8xf32>
    %cst_56 = arith.constant dense<0xFF800000> : vector<8x8xf32>
    %179 = vector.multi_reduction <maximumf>, %178, %cst_56 [2] : vector<8x8x8xf32> to vector<8x8xf32>
    %180 = vector.shape_cast %179 : vector<8x8xf32> to vector<8x8x1xf32>
    %181 = vector.broadcast %180 : vector<8x8x1xf32> to vector<8x8x8xf32>
    %182 = arith.subf %178, %181 : vector<8x8x8xf32>
    %183 = math.exp %182 : vector<8x8x8xf32>
    %cst_57 = arith.constant dense<0.000000e+00> : vector<8x8xf32>
    %184 = vector.multi_reduction <add>, %183, %cst_57 [2] : vector<8x8x8xf32> to vector<8x8xf32>
    %185 = vector.shape_cast %184 : vector<8x8xf32> to vector<8x8x1xf32>
    %186 = tpu.reciprocal %185 {approx = true} : vector<8x8x1xf32> -> vector<8x8x1xf32>
    %187 = vector.broadcast %186 : vector<8x8x1xf32> to vector<8x8x8xf32>
    %188 = arith.mulf %183, %187 : vector<8x8x8xf32>
    %189 = arith.truncf %188 : vector<8x8x8xf32> to vector<8x8x8xbf16>
    %190 = arith.truncf %175 : vector<8x8x8xf32> to vector<8x8x8xbf16>
    %cst_58 = arith.constant dense<0.000000e+00> : vector<8x8x8xf32>
    %191 = tpu.matmul %189, %190, %cst_58 {dimension_numbers = #tpu.dot_dimension_numbers<[2], [1], [1], [2], [0, 0, 0, 1, 1, 2], [0], [0]>} : vector<8x8x8xbf16>, vector<8x8x8xbf16>, vector<8x8x8xf32> -> vector<8x8x8xf32>
    %192 = vector.shape_cast %191 : vector<8x8x8xf32> to vector<4x16x8xf32>
    %193 = vector.extract_strided_slice %192 {offsets = [0, 0, 0], sizes = [1, 16, 8], strides = [1, 1, 1]} : vector<4x16x8xf32> to vector<1x16x8xf32>
    %194 = vector.shape_cast %193 : vector<1x16x8xf32> to vector<16x8xf32>
    %195 = vector.extract_strided_slice %192 {offsets = [1, 0, 0], sizes = [1, 16, 8], strides = [1, 1, 1]} : vector<4x16x8xf32> to vector<1x16x8xf32>
    %196 = vector.shape_cast %195 : vector<1x16x8xf32> to vector<16x8xf32>
    %197 = vector.extract_strided_slice %192 {offsets = [2, 0, 0], sizes = [1, 16, 8], strides = [1, 1, 1]} : vector<4x16x8xf32> to vector<1x16x8xf32>
    %198 = vector.shape_cast %197 : vector<1x16x8xf32> to vector<16x8xf32>
    %199 = vector.extract_strided_slice %192 {offsets = [3, 0, 0], sizes = [1, 16, 8], strides = [1, 1, 1]} : vector<4x16x8xf32> to vector<1x16x8xf32>
    %200 = vector.shape_cast %199 : vector<1x16x8xf32> to vector<16x8xf32>
    %201 = tpu.concatenate %194, %196, %198, %200 in 1 : vector<16x8xf32>, vector<16x8xf32>, vector<16x8xf32>, vector<16x8xf32> -> vector<16x32xf32>
    %202 = arith.truncf %201 : vector<16x32xf32> to vector<16x32xbf16>
    %cst_59 = arith.constant dense<0.000000e+00> : vector<16x32xf32>
    %203 = tpu.matmul %202, %6, %cst_59 {dimension_numbers = #tpu.dot_dimension_numbers<[1], [0], [0], [1], [0, 0, 1, 1], [], []>} : vector<16x32xbf16>, vector<32x32xbf16>, vector<16x32xf32> -> vector<16x32xf32>
    %204 = vector.broadcast %10 : vector<1x32xf32> to vector<16x32xf32>
    %205 = arith.addf %203, %204 : vector<16x32xf32>
    %206 = arith.addf %134, %205 : vector<16x32xf32>
    %cst_60 = arith.constant dense<0.000000e+00> : vector<16xf32>
    %207 = vector.multi_reduction <add>, %206, %cst_60 [1] : vector<16x32xf32> to vector<16xf32>
    %208 = vector.shape_cast %207 : vector<16xf32> to vector<16x1xf32>
    %cst_61 = arith.constant 3.200000e+01 : f32
    %209 = vector.broadcast %cst_61 : f32 to vector<16x1xf32>
    %210 = arith.divf %208, %209 : vector<16x1xf32>
    %211 = vector.broadcast %210 : vector<16x1xf32> to vector<16x32xf32>
    %212 = arith.subf %206, %211 : vector<16x32xf32>
    %213 = vector.broadcast %210 : vector<16x1xf32> to vector<16x32xf32>
    %214 = arith.subf %206, %213 : vector<16x32xf32>
    %215 = arith.mulf %212, %214 : vector<16x32xf32>
    %cst_62 = arith.constant dense<0.000000e+00> : vector<16xf32>
    %216 = vector.multi_reduction <add>, %215, %cst_62 [1] : vector<16x32xf32> to vector<16xf32>
    %217 = vector.shape_cast %216 : vector<16xf32> to vector<16x1xf32>
    %cst_63 = arith.constant 3.200000e+01 : f32
    %218 = vector.broadcast %cst_63 : f32 to vector<16x1xf32>
    %219 = arith.divf %217, %218 : vector<16x1xf32>
    %220 = vector.broadcast %210 : vector<16x1xf32> to vector<16x32xf32>
    %221 = arith.subf %206, %220 : vector<16x32xf32>
    %cst_64 = arith.constant 9.99999974E-6 : f32
    %222 = vector.broadcast %cst_64 : f32 to vector<16x1xf32>
    %223 = arith.addf %219, %222 : vector<16x1xf32>
    %224 = math.rsqrt %223 : vector<16x1xf32>
    %225 = vector.broadcast %224 : vector<16x1xf32> to vector<16x32xf32>
    %226 = arith.mulf %221, %225 : vector<16x32xf32>
    %227 = vector.broadcast %15 : vector<1x32xf32> to vector<16x32xf32>
    %228 = arith.mulf %226, %227 : vector<16x32xf32>
    %229 = vector.broadcast %16 : vector<1x32xf32> to vector<16x32xf32>
    %230 = arith.addf %228, %229 : vector<16x32xf32>
    %231 = arith.truncf %230 : vector<16x32xf32> to vector<16x32xbf16>
    %cst_65 = arith.constant dense<0.000000e+00> : vector<16x64xf32>
    %232 = tpu.matmul %231, %7, %cst_65 {dimension_numbers = #tpu.dot_dimension_numbers<[1], [0], [0], [1], [0, 0, 1, 1], [], []>} : vector<16x32xbf16>, vector<32x64xbf16>, vector<16x64xf32> -> vector<16x64xf32>
    %233 = vector.broadcast %11 : vector<1x64xf32> to vector<16x64xf32>
    %234 = arith.addf %232, %233 : vector<16x64xf32>
    %cst_66 = arith.constant 5.000000e-01 : f32
    %235 = vector.broadcast %cst_66 : f32 to vector<16x64xf32>
    %236 = arith.mulf %235, %234 : vector<16x64xf32>
    %cst_67 = arith.constant 4.471500e-02 : f32
    %237 = vector.broadcast %cst_67 : f32 to vector<16x64xf32>
    %238 = arith.mulf %237, %234 : vector<16x64xf32>
    %239 = arith.mulf %238, %234 : vector<16x64xf32>
    %240 = arith.mulf %239, %234 : vector<16x64xf32>
    %241 = arith.addf %234, %240 : vector<16x64xf32>
    %cst_68 = arith.constant 0.797884583 : f32
    %242 = vector.broadcast %cst_68 : f32 to vector<16x64xf32>
    %243 = arith.mulf %242, %241 : vector<16x64xf32>
    %244 = math.tanh %243 : vector<16x64xf32>
    %cst_69 = arith.constant 1.000000e+00 : f32
    %245 = vector.broadcast %cst_69 : f32 to vector<16x64xf32>
    %246 = arith.addf %245, %244 : vector<16x64xf32>
    %247 = arith.mulf %236, %246 : vector<16x64xf32>
    %248 = arith.truncf %247 : vector<16x64xf32> to vector<16x64xbf16>
    %cst_70 = arith.constant dense<0.000000e+00> : vector<16x32xf32>
    %249 = tpu.matmul %248, %8, %cst_70 {dimension_numbers = #tpu.dot_dimension_numbers<[1], [0], [0], [1], [0, 0, 1, 1], [], []>} : vector<16x64xbf16>, vector<64x32xbf16>, vector<16x32xf32> -> vector<16x32xf32>
    %250 = vector.broadcast %12 : vector<1x32xf32> to vector<16x32xf32>
    %251 = arith.addf %249, %250 : vector<16x32xf32>
    %252 = arith.addf %206, %251 : vector<16x32xf32>
    %253 = vector.shape_cast %252 : vector<16x32xf32> to vector<2x8x32xf32>
    %254 = vector.extract_strided_slice %253 {offsets = [0, 0, 0], sizes = [1, 8, 32], strides = [1, 1, 1]} : vector<2x8x32xf32> to vector<1x8x32xf32>
    %255 = vector.shape_cast %254 : vector<1x8x32xf32> to vector<8x32xf32>
    %c0_71 = arith.constant 0 : index
    %c0_72 = arith.constant 0 : index
    %c0_73 = arith.constant 0 : index
    %256 = vector.load %arg14[%c0_71, %c0_72, %c0_73] : memref<8x2x32xf32, #tpu.memory_space<vmem>>, vector<8x1x32xf32>
    %257 = vector.shape_cast %256 : vector<8x1x32xf32> to vector<8x32xf32>
    %258 = vector.shape_cast %255 : vector<8x32xf32> to vector<8x1x32xf32>
    tpu.vector_store %arg14[%c0_71, %c0_72, %c0_73], %258 {strides = array<i32>} : memref<8x2x32xf32, #tpu.memory_space<vmem>>, vector<8x1x32xf32>,
    %259 = vector.extract_strided_slice %253 {offsets = [1, 0, 0], sizes = [1, 8, 32], strides = [1, 1, 1]} : vector<2x8x32xf32> to vector<1x8x32xf32>
    %260 = vector.shape_cast %259 : vector<1x8x32xf32> to vector<8x32xf32>
    %c0_74 = arith.constant 0 : index
    %c1_75 = arith.constant 1 : index
    %c0_76 = arith.constant 0 : index
    %261 = vector.load %arg14[%c0_74, %c1_75, %c0_76] : memref<8x2x32xf32, #tpu.memory_space<vmem>>, vector<8x1x32xf32>
    %262 = vector.shape_cast %261 : vector<8x1x32xf32> to vector<8x32xf32>
    %263 = vector.shape_cast %260 : vector<8x32xf32> to vector<8x1x32xf32>
    tpu.vector_store %arg14[%c0_74, %c1_75, %c0_76], %263 {strides = array<i32>} : memref<8x2x32xf32, #tpu.memory_space<vmem>>, vector<8x1x32xf32>,
    return
  }
  func.func @transform_0(%arg0: i32) -> (i32, i32, i32) {
    %c0_i32 = arith.constant 0 : i32
    %c0_i32_0 = arith.constant 0 : i32
    %c0_i32_1 = arith.constant 0 : i32
    %c0_i32_2 = arith.constant 0 : i32
    return %c0_i32, %c0_i32_0, %c0_i32_1 : i32, i32, i32
  }
  func.func @transform_1(%arg0: i32) -> (i32, i32) {
    %c0_i32 = arith.constant 0 : i32
    %c0_i32_0 = arith.constant 0 : i32
    %c0_i32_1 = arith.constant 0 : i32
    return %c0_i32, %c0_i32_0 : i32, i32
  }
  func.func @transform_2(%arg0: i32) -> (i32, i32) {
    %c0_i32 = arith.constant 0 : i32
    %c0_i32_0 = arith.constant 0 : i32
    %c0_i32_1 = arith.constant 0 : i32
    return %c0_i32, %c0_i32_0 : i32, i32
  }
  func.func @transform_3(%arg0: i32) -> (i32, i32) {
    %c0_i32 = arith.constant 0 : i32
    %c0_i32_0 = arith.constant 0 : i32
    %c0_i32_1 = arith.constant 0 : i32
    return %c0_i32, %c0_i32_0 : i32, i32
  }
  func.func @transform_4(%arg0: i32) -> (i32, i32) {
    %c0_i32 = arith.constant 0 : i32
    %c0_i32_0 = arith.constant 0 : i32
    %c0_i32_1 = arith.constant 0 : i32
    return %c0_i32, %c0_i32_0 : i32, i32
  }
  func.func @transform_5(%arg0: i32) -> (i32, i32) {
    %c0_i32 = arith.constant 0 : i32
    %c0_i32_0 = arith.constant 0 : i32
    %c0_i32_1 = arith.constant 0 : i32
    return %c0_i32, %c0_i32_0 : i32, i32
  }
  func.func @transform_6(%arg0: i32) -> (i32, i32) {
    %c0_i32 = arith.constant 0 : i32
    %c0_i32_0 = arith.constant 0 : i32
    %c0_i32_1 = arith.constant 0 : i32
    return %c0_i32, %c0_i32_0 : i32, i32
  }
  func.func @transform_7(%arg0: i32) -> (i32, i32) {
    %c0_i32 = arith.constant 0 : i32
    %c0_i32_0 = arith.constant 0 : i32
    %c0_i32_1 = arith.constant 0 : i32
    return %c0_i32, %c0_i32_0 : i32, i32
  }
  func.func @transform_8(%arg0: i32) -> (i32, i32) {
    %c0_i32 = arith.constant 0 : i32
    %c0_i32_0 = arith.constant 0 : i32
    %c0_i32_1 = arith.constant 0 : i32
    return %c0_i32, %c0_i32_0 : i32, i32
  }
  func.func @transform_9(%arg0: i32) -> (i32, i32) {
    %c0_i32 = arith.constant 0 : i32
    %c0_i32_0 = arith.constant 0 : i32
    %c0_i32_1 = arith.constant 0 : i32
    return %c0_i32, %c0_i32_0 : i32, i32
  }
  func.func @transform_10(%arg0: i32) -> (i32, i32) {
    %c0_i32 = arith.constant 0 : i32
    %c0_i32_0 = arith.constant 0 : i32
    %c0_i32_1 = arith.constant 0 : i32
    return %c0_i32, %c0_i32_0 : i32, i32
  }
  func.func @transform_11(%arg0: i32) -> (i32, i32) {
    %c0_i32 = arith.constant 0 : i32
    %c0_i32_0 = arith.constant 0 : i32
    %c0_i32_1 = arith.constant 0 : i32
    return %c0_i32, %c0_i32_0 : i32, i32
  }
  func.func @transform_12(%arg0: i32) -> (i32, i32) {
    %c0_i32 = arith.constant 0 : i32
    %c0_i32_0 = arith.constant 0 : i32
    %c0_i32_1 = arith.constant 0 : i32
    return %c0_i32, %c0_i32_0 : i32, i32
  }
  func.func @transform_13(%arg0: i32) -> (i32, i32, i32) {
    %c0_i32 = arith.constant 0 : i32
    %c0_i32_0 = arith.constant 0 : i32
    %c0_i32_1 = arith.constant 0 : i32
    %c0_i32_2 = arith.constant 0 : i32
    return %c0_i32, %c0_i32_0, %c0_i32_1 : i32, i32, i32
  }
}

</mosaic_0001>

<bundles_post_ra>
// kernel: tpu_custom_call.1
= control target key start
LH: loop header
LB: loop body
LE: loop exit
PB: predicated region body
PF: predicated region fallthrough
CT: control target
= control target key end

     0   :  { %18 = vsyncpa [#allocation3], 0  ;;  %s4395_s0 = inlined_call_operand.vmem [shape: f32[8,2,32], index: 0, kind: input, shape index: {}]   ;;  %s4396_s1 = inlined_call_operand.vmem [shape: bf16[32,96], index: 1, kind: input, shape index: {}]   ;;  %s4397_s2 = inlined_call_operand.vmem [shape: f32[1,96], index: 2, kind: input, shape index: {}]   ;;  %s4398_s3 = inlined_call_operand.vmem [shape: bf16[32,32], index: 3, kind: input, shape index: {}]   ;;  %s4399_s4 = inlined_call_operand.vmem [shape: f32[1,32], index: 4, kind: input, shape index: {}]   ;;  %s4400_s5 = inlined_call_operand.hbm [shape: f32[1,32], index: 5, kind: input, shape index: {}]   ;;  %s4401_s6 = inlined_call_operand.hbm [shape: f32[1,32], index: 6, kind: input, shape index: {}]   ;;  %s4402_s7 = inlined_call_operand.hbm [shape: f32[1,32], index: 7, kind: input, shape index: {}]   ;;  %s4403_s8 = inlined_call_operand.hbm [shape: f32[1,32], index: 8, kind: input, shape index: {}]   ;;  %s4404_s9 = inlined_call_operand.vmem [shape: bf16[32,64], index: 9, kind: input, shape index: {}]   ;;  %s4405_s10 = inlined_call_operand.vmem [shape: f32[1,64], index: 10, kind: input, shape index: {}]   ;;  %s4406_s11 = inlined_call_operand.vmem [shape: bf16[64,32], index: 11, kind: input, shape index: {}]   ;;  %s4407_s12 = inlined_call_operand.vmem [shape: f32[1,32], index: 12, kind: input, shape index: {}]   ;;  %s4408_s13 = inlined_call_operand.hbm [shape: f32[8,2,32], index: 13, kind: output, shape index: {}]  }
   0x1   :  { %19 = vsyncpa [#allocation6], 0 }
   0x2   :  { %20 = vsyncpa [#allocation9], 0 }
   0x3   :  { %21 = vsyncpa [#allocation4], 0  ;;  %s3549_s25 = smov [#allocation5]   ;;  %s3550_s27 = smov [#allocation2]  }
   0x4   :  { %s48_s26 = sshll.u32 %s3549_s25, 4  ;;  %s38_s28 = sshll.u32 %s3550_s27, 4  ;;  %s49_s26 = int_to_ptr.vmem [resolvable:$true] %s48_s26  ;;  %s39_s28 = int_to_ptr.vmem [resolvable:$true] %s38_s28 }
   0x5   :  { %s3431_s14 = scalar_lea.hbm %s4401_s6, 16 }
   0x6   :  { %p3432_p0 = scmp.ne.s32.totalorder %s4401_s6, %s3431_s14  ;;  %p3435_p1 = scmp.lt.u32.totalorder %s3431_s14, %s4401_s6 }
   0x8   :  { %p3437_p2 = pnand %p3435_p1, %p3432_p0 }
   0xa   :  { %3440 = shalt.err (!%p3437_p2)
}
   0xb   :  { %s3441_s19 = scalar_lea.vmem %s49_s26, 16  ;;  %s3445_s20 = scalar_lea.vmem %s49_s26, 32 }
   0xc   :  { %p3442_p3 = scmp.ne.s32.totalorder %s49_s26, %s3441_s19  ;;  %p3446_p4 = scmp.lt.s32.totalorder %s49_s26, %s49_s26 }
   0xd   :  { %p3447_p5 = scmp.lt.s32.totalorder %s3445_s20, %s3441_s19 }
   0xf   :  { %p3448_p6 = por %p3447_p5, %p3446_p4 }
  0x11   :  { %p3449_p7 = pnand %p3448_p6, %p3442_p3 }
  0x13   :  { %3452 = shalt.err (!%p3449_p7)
}
  0x14   :  { %51 = dma.hbm_to_vmem [thread:$0]  %s4401_s6, 16, %s49_s26, [#allocation6]  }
  0x15   :  { %s3453_s25 = scalar_lea.hbm %s4400_s5, 16 }
  0x16   :  { %p3454_p8 = scmp.ne.s32.totalorder %s4400_s5, %s3453_s25  ;;  %p3457_p9 = scmp.lt.u32.totalorder %s3453_s25, %s4400_s5 }
  0x18   :  { %p3459_p10 = pnand %p3457_p9, %p3454_p8 }
  0x1a   :  { %3462 = shalt.err (!%p3459_p10)
}
  0x1b   :  { %s3463_s15 = scalar_lea.vmem %s39_s28, 16  ;;  %s3467_s16 = scalar_lea.vmem %s39_s28, 32 }
  0x1c   :  { %p3464_p11 = scmp.ne.s32.totalorder %s39_s28, %s3463_s15  ;;  %p3468_p12 = scmp.lt.s32.totalorder %s39_s28, %s39_s28 }
  0x1d   :  { %p3469_p13 = scmp.lt.s32.totalorder %s3467_s16, %s3463_s15 }
  0x1f   :  { %p3470_p0 = por %p3469_p13, %p3468_p12 }
  0x21   :  { %p3471_p1 = pnand %p3470_p0, %p3464_p11 }
  0x23   :  { %3474 = shalt.err (!%p3471_p1)
}
  0x24   :  { %41 = dma.hbm_to_vmem [thread:$0]  %s4400_s5, 16, %s39_s28, [#allocation3]  }
  0x25   :  { %s3551_s17 = smov [#allocation7]   ;;  %s3552_s19 = smov [#allocation8]  }
  0x26   :  { %s58_s18 = sshll.u32 %s3551_s17, 4  ;;  %s68_s20 = sshll.u32 %s3552_s19, 4  ;;  %s59_s18 = int_to_ptr.vmem [resolvable:$true] %s58_s18  ;;  %s69_s20 = int_to_ptr.vmem [resolvable:$true] %s68_s20 }
  0x27   :  { %s3475_s23 = scalar_lea.hbm %s4402_s7, 16 }
  0x28   :  { %p3476_p2 = scmp.ne.s32.totalorder %s4402_s7, %s3475_s23  ;;  %p3479_p3 = scmp.lt.u32.totalorder %s3475_s23, %s4402_s7 }
  0x2a   :  { %p3481_p4 = pnand %p3479_p3, %p3476_p2 }
  0x2c   :  { %3484 = shalt.err (!%p3481_p4)
}
  0x2d   :  { %s3485_s5 = scalar_lea.vmem %s59_s18, 16  ;;  %s3489_s28 = scalar_lea.vmem %s59_s18, 32 }
  0x2e   :  { %p3486_p5 = scmp.ne.s32.totalorder %s59_s18, %s3485_s5  ;;  %p3490_p6 = scmp.lt.s32.totalorder %s59_s18, %s59_s18 }
  0x2f   :  { %p3491_p7 = scmp.lt.s32.totalorder %s3489_s28, %s3485_s5 }
  0x31   :  { %p3492_p8 = por %p3491_p7, %p3490_p6 }
  0x33   :  { %p3493_p9 = pnand %p3492_p8, %p3486_p5 }
  0x35   :  { %3496 = shalt.err (!%p3493_p9)
}
  0x36   :  { %61 = dma.hbm_to_vmem [thread:$0]  %s4402_s7, 16, %s59_s18, [#allocation6]  }
  0x37   :  { %s3497_s6 = scalar_lea.hbm %s4403_s8, 16 }
  0x38   :  { %p3498_p10 = scmp.ne.s32.totalorder %s4403_s8, %s3497_s6  ;;  %p3501_p11 = scmp.lt.u32.totalorder %s3497_s6, %s4403_s8 }
  0x3a   :  { %p3503_p12 = pnand %p3501_p11, %p3498_p10 }
  0x3c   :  { %3506 = shalt.err (!%p3503_p12)
}
  0x3d   :  { %s3507_s22 = scalar_lea.vmem %s69_s20, 16  ;;  %s3511_s23 = scalar_lea.vmem %s69_s20, 32 }
  0x3e   :  { %p3508_p13 = scmp.ne.s32.totalorder %s69_s20, %s3507_s22  ;;  %p3512_p0 = scmp.lt.s32.totalorder %s69_s20, %s69_s20 }
  0x3f   :  { %p3513_p1 = scmp.lt.s32.totalorder %s3511_s23, %s3507_s22 }
  0x41   :  { %p3514_p2 = por %p3513_p1, %p3512_p0 }
  0x43   :  { %p3515_p3 = pnand %p3514_p2, %p3508_p13 }
  0x45   :  { %3518 = shalt.err (!%p3515_p3)
}
  0x46   :  { %71 = dma.hbm_to_vmem [thread:$0]  %s4403_s8, 16, %s69_s20, [#allocation9]  }
  0x47   :  { %3541 = dma.done.wait [#allocation3], 16  }
  0x48   :  { %3542 = vsyncadd [#allocation3], 4294967280 }
  0x49   :  { %3543 = dma.done.wait [#allocation6], 32  }
  0x4a   :  { %3544 = vsyncadd [#allocation6], 4294967264 }
  0x4b   :  { %3545 = dma.done.wait [#allocation9], 16  }
  0x4c   :  { %3546 = vsyncadd [#allocation9], 4294967280  ;;  %vm118_vm0 = vcmask 1041409   ;;  %vm121_vm1 = vcmask 1042434   ;;  %vm124_vm2 = vcmask 1043459   ;;  %vm127_vm3 = vcmask 1044484  }
  0x4d   :  { %vm130_vm4 = vcmask 1045509   ;;  %vm133_vm5 = vcmask 1046534   ;;  %vm136_vm6 = vcmask 1047559   ;;  %v93_v0 = vld [vmem:[%s4395_s0] sm:$0x1]  ;;  %vm190_vm7 = vcmask 261120  }
  0x4e   :  { %v94_v1 = vld [vmem:[%s4395_s0 + $0x2] sm:$0x1]  ;;  %v95_v2 = vld [vmem:[%s4395_s0 + $0x4] sm:$0x1]  ;;  %v96_v3 = vld [vmem:[%s4395_s0 + $0x6] sm:$0x1] }
  0x4f   :  { %v97_v4 = vld [vmem:[%s4395_s0 + $0x8] sm:$0x1]  ;;  %v98_v5 = vld [vmem:[%s4395_s0 + $0xa] sm:$0x1]  ;;  %v99_v6 = vld [vmem:[%s4395_s0 + $0xc] sm:$0x1] }
  0x50   :  { %v100_v7 = vld [vmem:[%s4395_s0 + $0xe] sm:$0x1]  ;;  %v117_v8 = vrot.slane %v94_v1, 7  ;;  %v120_v9 = vrot.slane %v95_v2, 6  ;;  %v123_v10 = vrot.slane %v96_v3, 5  ;;  %v126_v11 = vrot.slane %v97_v4, 4 }
  0x51   :  { %v129_v12 = vrot.slane %v98_v5, 3  ;;  %v101_v13 = vld [vmem:[%s4395_s0 + $0x1] sm:$0x1]  ;;  %v132_v15 = vrot.slane %v99_v6, 2  ;;  %v135_v16 = vrot.slane %v100_v7, 1  ;;  %v3553_v57 = vmov 0.0  }
  0x52   :  { %v119_v14 = vsel %vm118_vm0, %v117_v8, %v93_v0  ;;  %v102_v17 = vld [vmem:[%s4395_s0 + $0x3] sm:$0x1]  ;;  %v103_v18 = vld [vmem:[%s4395_s0 + $0x5] sm:$0x1]  ;;  %v104_v20 = vld [vmem:[%s4395_s0 + $0x7] sm:$0x1]  ;;  %2991 = vmatprep.subr.bf16.mxu1 %v3553_v57  ;;  %3005 = vmatprep.subr.bf16.mxu0 %v3553_v57 }
  0x53   :  { %v122_v19 = vsel %vm121_vm1, %v120_v9, %v119_v14  ;;  %v105_v21 = vld [vmem:[%s4395_s0 + $0x9] sm:$0x1]  ;;  %v106_v22 = vld [vmem:[%s4395_s0 + $0xb] sm:$0x1]  ;;  %v107_v24 = vld [vmem:[%s4395_s0 + $0xd] sm:$0x1] }
  0x54   :  { %v125_v23 = vsel %vm124_vm2, %v123_v10, %v122_v19  ;;  %v108_v25 = vld [vmem:[%s4395_s0 + $0xf] sm:$0x1]  ;;  %v147_v26 = vrot.slane %v102_v17, 7  ;;  %v149_v27 = vrot.slane %v103_v18, 6  ;;  %v151_v29 = vrot.slane %v104_v20, 5  ;;  %v3762_v56 = vld [vmem:[%s4396_s1] sm:$0xff]  }
  0x55   :  { %v128_v28 = vsel %vm127_vm3, %v126_v11, %v125_v23  ;;  %v153_v30 = vrot.slane %v105_v21, 4  ;;  %v155_v31 = vrot.slane %v106_v22, 3  ;;  %v157_v34 = vrot.slane %v107_v24, 2  ;;  %2992 = vmatpush3.bf16.msra.mxu1 %v3762_v56  ;;  %v3770_v58 = vld [vmem:[%s4396_s1 + $0x8] sm:$0xff]   ;;  %v3779_v3 = vld [vmem:[#allocation2] ss:$0 sm:$0xff] }
  0x56   :  { %v131_v32 = vsel %vm130_vm4, %v129_v12, %v128_v28  ;;  %v148_v33 = vsel %vm118_vm0, %v147_v26, %v101_v13  ;;  %v159_v35 = vrot.slane %v108_v25, 1  ;;  %vm3554_vm8 = vmmov 0   ;;  %2993 = vmatprep.subr.bf16.mxu1 %v3553_v57  ;;  %v3782_v7 = vld [vmem:[#allocation5] ss:$0 sm:$0xff]  ;;  %v3793_v12 = vld [vmem:[%s4397_s2] ss:$0 sm:$0xff] }
  0x57   :  { %v134_v36 = vsel %vm133_vm5, %v132_v15, %v131_v32  ;;  %v150_v37 = vsel %vm121_vm1, %v149_v27, %v148_v33  ;;  %2995 = vmatprep.mubr.msk.bf16.mxu1 %vm3554_vm8, %v3553_v57  ;;  %3007 = vmatprep.mubr.msk.bf16.mxu0 %vm3554_vm8, %v3553_v57  ;;  %s3555_s19 = smov 80   ;;  %s3556_s21 = smov 104   ;;  %vm328_vm9 = vcmask 64512   ;;  %vm819_vm10 = vcmask 1043456  }
  0x58   :  { %v3742_v38 = vsel %vm136_vm6, %v135_v16, %v134_v36  ;;  %v152_v39 = vsel %vm124_vm2, %v151_v29, %v150_v37  ;;  %s3557_s22 = smov 56   ;;  %s3558_s2 = smov 120   ;;  %vm1225_vm11 = vcmask 130048   ;;  %vm1228_vm12 = vcmask 195584  }
  0x59   :  { %v191_v40 = vsel %vm190_vm7, %v3742_v38, 0.0  ;;  %v154_v41 = vsel %vm127_vm3, %v153_v30, %v152_v39  ;;  %2994 = vmatpush3.bf16.msra.mxu1 %v3770_v58  ;;  %s3559_s23 = smov 112   ;;  %s3560_s7 = smov 8   ;;  %vm1450_vm13 = vcmask 523264   ;;  %vm2747_vm14 = vcmask 253952  }
  0x5a   :  { %192 = vadd.xlane.f32.xlu0 %v191_v40  ;;  %v156_v42 = vsel %vm130_vm4, %v155_v31, %v154_v41  ;;  %2999 = vmatprep.subr.bf16.mxu1 %v3553_v57  ;;  %s3561_s29 = smov 16   ;;  %s3562_s8 = smov 24  }
  0x5b   :  { %v158_v43 = vsel %vm133_vm5, %v157_v34, %v156_v42 }
  0x5c   :  { %v3751_v44 = vsel %vm136_vm6, %v159_v35, %v158_v43 }
  0x5d   :  { %v194_v45 = vsel %vm190_vm7, %v3751_v44, 0.0 }
  0x5e   :  { %195 = vadd.xlane.f32.xlu0 %v194_v45 }
  0xe7   :  { %v193_v46 = vpop.xlane.xlu0 %192 }
  0xe8   :  { %v198_v47 = vmul.f32 0.03125, %v193_v46 }
  0xea   :  { %v200_v48 = vsub.f32 %v3742_v38, %v198_v47 }
  0xeb   :  { %v196_v49 = vpop.xlane.xlu0 %195 }
  0xec   :  { %v199_v50 = vmul.f32 0.03125, %v196_v49  ;;  %v202_v51 = vmul.f32 %v200_v48, %v200_v48 }
  0xee   :  { %v201_v52 = vsub.f32 %v3751_v44, %v199_v50  ;;  %v204_v53 = vsel %vm190_vm7, %v202_v51, 0.0 }
  0xef   :  { %205 = vadd.xlane.f32.xlu1 %v204_v53 }
  0xf0   :  { %v203_v54 = vmul.f32 %v201_v52, %v201_v52 }
  0xf2   :  { %v207_v55 = vsel %vm190_vm7, %v203_v54, 0.0 }
  0xf3   :  { %208 = vadd.xlane.f32.xlu1 %v207_v55 }
 0x17c   :  { %v206_v59 = vpop.xlane.xlu1 %205 }
 0x17d   :  { %v210_v60 = vmul.f32 0.03125, %v206_v59 }
 0x17f   :  { %v212_v61 = vadd.f32 1e-05, %v210_v60 }
 0x180   :  { %v209_v62 = vpop.xlane.xlu1 %208 }
 0x181   :  { %3343 = vrsqrt.f32 %v212_v61  ;;  %v211_v63 = vmul.f32 0.03125, %v209_v62 }
 0x183   :  { %v213_v0 = vadd.f32 1e-05, %v211_v63 }
 0x185   :  { %3345 = vrsqrt.f32 %v213_v0 }
 0x18b   :  { %v3344_v1 = vpop.eup %3343 }
 0x18c   :  { %v216_v2 = vmul.f32 %v3344_v1, %v200_v48 }
 0x18e   :  { %v224_v6 = vmul.f32 %v3779_v3, %v216_v2 }
 0x18f   :  { %v3346_v4 = vpop.eup %3345 }
 0x190   :  { %v217_v5 = vmul.f32 %v3346_v4, %v201_v52  ;;  %v232_v9 = vadd.f32 %v3782_v7, %v224_v6 }
 0x192   :  { %v225_v8 = vmul.f32 %v3779_v3, %v217_v5 }
 0x194   :  { %v233_v10 = vadd.f32 %v3782_v7, %v225_v8 }
 0x196   :  { %v234_v11 = vpack.c.bf16 %v233_v10, %v232_v9 }
 0x198   :  { %2996 = vmatmul.mubr.msk.bf16.vlgmr.msra.gmra.mrb[0].mxu1 %vm190_vm7, %v234_v11 }
 0x199   :  { %3001 = vmatprep.mubr.msk.bf16.mxu1 %vm3554_vm8, %v3553_v57 }
 0x26b   :  { %v290_v13 = vpop.f32.mrb[0].mxu1 }
 0x26c   :  { %v2997_v14 = vpop.f32.mrb[1].mxu1  ;;  %v291_v16 = vadd.f32 %v3793_v12, %v290_v13 }
 0x26d   :  { %v293_v15 = vpop.f32.mrb[2].mxu1 }
 0x26e   :  { %v294_v17 = vadd.f32 %v3793_v12, %v293_v15  ;;  %v2998_v18 = vpop.f32.mrb[3].mxu1  ;;  %v317_v21 = vpack.c.bf16 %v291_v16, %v291_v16 }
 0x270   :  { %v3278_v19 = vpack.i.bf16 %v294_v17, %v291_v16  ;;  %v3799_v20 = vpack.c.bf16 %v294_v17, %v294_v17 }
 0x272   :  { %3279 = vrot.lane.b32.xlu1 %v3278_v19, %s3555_s19  ;;  %3274 = vrot.lane.b32.xlu0 %v3278_v19, %s3556_s21 }
 0x276   :  { %3284 = vrot.lane.b32.xlu1 %v3278_v19, %s3557_s22  ;;  %376 = vrot.lane.b32.xlu0 %v3799_v20, %s3558_s2 }
 0x27a   :  { %326 = vrot.lane.b32.xlu1 %v317_v21, %s3558_s2 }
 0x2e4   :  { %v3280_v22 = vpop.permute.xlu1 %3279  ;;  %v3275_v23 = vpop.permute.xlu0 %3274 }
 0x2e5   :  { %v3277_v24 = vunpack.i.h.bf16 %v3275_v23  ;;  %v3276_v25 = vunpack.i.l.bf16 %v3275_v23  ;;  %v3282_v26 = vunpack.i.h.bf16 %v3280_v22  ;;  %v3281_v27 = vunpack.i.l.bf16 %v3280_v22 }
 0x2e7   :  { %v3805_v28 = vpack.c.bf16 %v3277_v24, %v3277_v24  ;;  %v3807_v29 = vpack.c.bf16 %v3276_v25, %v3276_v25  ;;  %v3814_v33 = vpack.c.bf16 %v3282_v26, %v3282_v26  ;;  %v3816_v34 = vpack.c.bf16 %v3281_v27, %v3281_v27 }
 0x2e8   :  { %v3285_v30 = vpop.permute.xlu1 %3284  ;;  %v377_v31 = vpop.permute.xlu0 %376 }
 0x2e9   :  { %425 = vrot.lane.b32.xlu1 %v3807_v29, %s3558_s2  ;;  %474 = vrot.lane.b32.xlu0 %v3805_v28, %s3558_s2  ;;  %v382_v32 = vsel %vm328_vm9, %v377_v31, 0  ;;  %v3287_v35 = vunpack.i.h.bf16 %v3285_v30  ;;  %v3286_v36 = vunpack.i.l.bf16 %v3285_v30 }
 0x2ea   :  { %3006 = vmatpush3.bf16.xpose.msra.mxu0 %v382_v32 }
 0x2eb   :  { %3017 = vmatprep.subr.bf16.mxu0 %v3553_v57  ;;  %v3824_v40 = vpack.c.bf16 %v3287_v35, %v3287_v35  ;;  %v3826_v41 = vpack.c.bf16 %v3286_v36, %v3286_v36 }
 0x2ec   :  { %v327_v37 = vpop.permute.xlu1 %326 }
 0x2ed   :  { %v333_v39 = vsel %vm328_vm9, %v327_v37, 0  ;;  %523 = vrot.lane.b32.xlu1 %v3816_v34, %s3558_s2  ;;  %572 = vrot.lane.b32.xlu0 %v3814_v33, %s3558_s2 }
 0x2ee   :  { %3000 = vmatpush3.bf16.xpose.msra.mxu1 %v333_v39 }
 0x2ef   :  { %3011 = vmatprep.subr.bf16.mxu1 %v3553_v57 }
 0x2f1   :  { %621 = vrot.lane.b32.xlu1 %v3826_v41, %s3558_s2  ;;  %670 = vrot.lane.b32.xlu0 %v3824_v40, %s3558_s2 }
 0x2f2   :  { %3008 = vmatmul.mubr.msk.bf16.vlgmr.msra.gmra.mrb[0].mxu0 %vm328_vm9, %v3799_v20 }
 0x2f3   :  { %3019 = vmatprep.mubr.msk.bf16.mxu0 %vm3554_vm8, %v3553_v57 }
 0x2f5   :  { %3002 = vmatmul.mubr.msk.bf16.vlgmr.msra.gmra.mrb[4].mxu1 %vm328_vm9, %v317_v21  ;;  %814 = vrot.lane.b32.xlu1 %v317_v21, %s3559_s23 }
 0x2f6   :  { %3013 = vmatprep.mubr.msk.bf16.mxu1 %vm3554_vm8, %v3553_v57 }
 0x35b   :  { %v426_v42 = vpop.permute.xlu1 %425  ;;  %v475_v43 = vpop.permute.xlu0 %474 }
 0x35c   :  { %v431_v45 = vsel %vm328_vm9, %v426_v42, 0  ;;  %v480_v46 = vsel %vm328_vm9, %v475_v43, 0 }
 0x35d   :  { %3012 = vmatpush3.bf16.xpose.msra.mxu1 %v431_v45  ;;  %3018 = vmatpush3.bf16.xpose.msra.mxu0 %v480_v46 }
 0x35e   :  { %3023 = vmatprep.subr.bf16.mxu1 %v3553_v57  ;;  %3029 = vmatprep.subr.bf16.mxu0 %v3553_v57 }
 0x35f   :  { %v524_v47 = vpop.permute.xlu1 %523  ;;  %v573_v48 = vpop.permute.xlu0 %572 }
 0x360   :  { %v529_v49 = vsel %vm328_vm9, %v524_v47, 0  ;;  %v578_v50 = vsel %vm328_vm9, %v573_v48, 0 }
 0x363   :  { %v622_v51 = vpop.permute.xlu1 %621  ;;  %v671_v52 = vpop.permute.xlu0 %670 }
 0x364   :  { %3014 = vmatmul.mubr.msk.bf16.vlgmr.msra.gmra.mrb[8].mxu1 %vm328_vm9, %v3807_v29  ;;  %3020 = vmatmul.mubr.msk.bf16.vlgmr.msra.gmra.mrb[4].mxu0 %vm328_vm9, %v3805_v28  ;;  %v627_v53 = vsel %vm328_vm9, %v622_v51, 0  ;;  %v676_v54 = vsel %vm328_vm9, %v671_v52, 0 }
 0x365   :  { %3024 = vmatpush3.bf16.xpose.msra.mxu1 %v529_v49  ;;  %3030 = vmatpush3.bf16.xpose.msra.mxu0 %v578_v50 }
 0x366   :  { %3025 = vmatprep.mubr.msk.bf16.mxu1 %vm3554_vm8, %v3553_v57  ;;  %3031 = vmatprep.mubr.msk.bf16.mxu0 %vm3554_vm8, %v3553_v57 }
 0x367   :  { %3035 = vmatprep.subr.bf16.mxu1 %v3553_v57  ;;  %3041 = vmatprep.subr.bf16.mxu0 %v3553_v57  ;;  %v815_v55 = vpop.permute.xlu1 %814 }
 0x368   :  { %v821_v59 = vsel %vm819_vm10, %v815_v55, 0 }
 0x36c   :  { %3026 = vmatmul.mubr.msk.bf16.vlgmr.msra.gmra.mrb[12].mxu1 %vm328_vm9, %v3816_v34  ;;  %3032 = vmatmul.mubr.msk.bf16.vlgmr.msra.gmra.mrb[8].mxu0 %vm328_vm9, %v3814_v33 }
 0x36d   :  { %3036 = vmatpush3.bf16.xpose.msra.mxu1 %v627_v53  ;;  %3042 = vmatpush3.bf16.xpose.msra.mxu0 %v676_v54 }
 0x36e   :  { %3037 = vmatprep.mubr.msk.bf16.mxu1 %vm3554_vm8, %v3553_v57  ;;  %3043 = vmatprep.mubr.msk.bf16.mxu0 %vm3554_vm8, %v3553_v57 }
 0x36f   :  { %3047 = vmatprep.subr.bf16.mxu1 %v3553_v57  ;;  %3053 = vmatprep.subr.bf16.mxu0 %v3553_v57 }
 0x374   :  { %3038 = vmatmul.mubr.msk.bf16.vlgmr.msra.gmra.mrb[16].mxu1 %vm328_vm9, %v3826_v41  ;;  %3044 = vmatmul.mubr.msk.bf16.vlgmr.msra.gmra.mrb[12].mxu0 %vm328_vm9, %v3824_v40 }
 0x375   :  { %3048 = vmatpush3.bf16.msra.mxu1 %v821_v59  ;;  %3055 = vmatprep.mubr.msk.bf16.mxu0 %vm3554_vm8, %v3553_v57 }
 0x376   :  { %3049 = vmatprep.mubr.msk.bf16.mxu1 %vm3554_vm8, %v3553_v57  ;;  %3059 = vmatprep.subr.bf16.mxu1 %v3553_v57 }
 0x3c5   :  { %v418_v60 = vpop.f32.mrb[0].mxu0 }
 0x3c6   :  { %v3009_v61 = vpop.f32.mrb[1].mxu0  ;;  %v721_v62 = vsel %vm328_vm9, %v418_v60, -inf }
 0x3c7   :  { %722 = vmax.xlane.f32.xlu0 %v721_v62  ;;  %v421_v63 = vpop.f32.mrb[2].mxu0 }
 0x3c8   :  { %v3010_v0 = vpop.f32.mrb[3].mxu0  ;;  %v369_v1 = vpop.f32.mrb[4].mxu1 }
 0x3c9   :  { %v3003_v2 = vpop.f32.mrb[5].mxu1  ;;  %v718_v4 = vsel %vm328_vm9, %v369_v1, -inf }
 0x3ca   :  { %719 = vmax.xlane.f32.xlu1 %v718_v4  ;;  %v372_v5 = vpop.f32.mrb[6].mxu1 }
 0x3cb   :  { %v3004_v6 = vpop.f32.mrb[7].mxu1 }
 0x437   :  { %v467_v8 = vpop.f32.mrb[8].mxu1  ;;  %v516_v9 = vpop.f32.mrb[4].mxu0 }
 0x438   :  { %v3015_v10 = vpop.f32.mrb[9].mxu1  ;;  %v3021_v11 = vpop.f32.mrb[5].mxu0  ;;  %v724_v13 = vsel %vm328_vm9, %v467_v8, -inf  ;;  %v727_v18 = vsel %vm328_vm9, %v516_v9, -inf }
 0x439   :  { %v519_v14 = vpop.f32.mrb[6].mxu0  ;;  %725 = vmax.xlane.f32.xlu0 %v724_v13  ;;  %v470_v15 = vpop.f32.mrb[10].mxu1 }
 0x43a   :  { %v3016_v16 = vpop.f32.mrb[11].mxu1  ;;  %v3022_v17 = vpop.f32.mrb[7].mxu0 }
 0x43d   :  { %728 = vmax.xlane.f32.xlu0 %v727_v18 }
 0x43f   :  { %v565_v19 = vpop.f32.mrb[12].mxu1  ;;  %v3883_v21 = vpop.f32.mrb[8].mxu0 }
 0x440   :  { %v3027_v22 = vpop.f32.mrb[13].mxu1  ;;  %v3033_v23 = vpop.f32.mrb[9].mxu0  ;;  %v733_v24 = vsel %vm328_vm9, %v3883_v21, -inf  ;;  %v730_v25 = vsel %vm328_vm9, %v565_v19, -inf }
 0x441   :  { %v617_v26 = vpop.f32.mrb[10].mxu0  ;;  %734 = vmax.xlane.f32.xlu0 %v733_v24  ;;  %731 = vmax.xlane.f32.xlu1 %v730_v25  ;;  %v568_v27 = vpop.f32.mrb[14].mxu1 }
 0x442   :  { %v3028_v30 = vpop.f32.mrb[15].mxu1  ;;  %v3034_v31 = vpop.f32.mrb[11].mxu0 }
 0x447   :  { %v663_v32 = vpop.f32.mrb[16].mxu1  ;;  %v3888_v35 = vpop.f32.mrb[12].mxu0 }
 0x448   :  { %v3039_v36 = vpop.f32.mrb[17].mxu1  ;;  %v3045_v37 = vpop.f32.mrb[13].mxu0  ;;  %v739_v39 = vsel %vm328_vm9, %v3888_v35, -inf  ;;  %v736_v42 = vsel %vm328_vm9, %v663_v32, -inf }
 0x449   :  { %v715_v43 = vpop.f32.mrb[14].mxu0  ;;  %740 = vmax.xlane.f32.xlu0 %v739_v39  ;;  %737 = vmax.xlane.f32.xlu1 %v736_v42  ;;  %v666_v45 = vpop.f32.mrb[18].mxu1 }
 0x44a   :  { %v3040_v46 = vpop.f32.mrb[19].mxu1  ;;  %v3046_v47 = vpop.f32.mrb[15].mxu0 }
 0x454   :  { %v723_v48 = vpop.xlane.xlu0 %722 }
 0x455   :  { %v743_v49 = vsub.f32 %v418_v60, %v723_v48 }
 0x457   :  { %v720_v50 = vpop.xlane.xlu1 %719  ;;  %v752_v51 = vmul.f32 1.442695, %v743_v49 }
 0x458   :  { %v742_v52 = vsub.f32 %v369_v1, %v720_v50 }
 0x459   :  { %3347 = vpow2.f32 %v752_v51 }
 0x45a   :  { %911 = vrot.lane.b32.xlu1 %v3807_v29, %s3559_s23  ;;  %v750_v53 = vmul.f32 1.442695, %v742_v52 }
 0x45c   :  { %3349 = vpow2.f32 %v750_v53 }
 0x45e   :  { %959 = vrot.lane.b32.xlu1 %v3805_v28, %s3559_s23 }
 0x45f   :  { %863 = vrot.lane.b32.xlu0 %v3799_v20, %s3559_s23 }
 0x463   :  { %v3348_v54 = vpop.eup %3347 }
 0x464   :  { %v769_v55 = vsel %vm328_vm9, %v3348_v54, 0.0 }
 0x466   :  { %v3900_v59 = vpop.eup %3349 }
 0x467   :  { %v766_v28 = vsel %vm328_vm9, %v3900_v59, 0.0 }
 0x47e   :  { %770 = vadd.xlane.f32.xlu0 %v769_v55 }
 0x482   :  { %767 = vadd.xlane.f32.xlu1 %v766_v28 }
 0x493   :  { %1007 = vrot.lane.b32.xlu1 %v3816_v34, %s3559_s23 }
 0x4c6   :  { %v726_v20 = vpop.xlane.xlu0 %725 }
 0x4c7   :  { %v744_v29 = vsub.f32 %v467_v8, %v726_v20 }
 0x4c9   :  { %v754_v60 = vmul.f32 1.442695, %v744_v29 }
 0x4ca   :  { %v729_v61 = vpop.xlane.xlu0 %728 }
 0x4cb   :  { %3351 = vpow2.f32 %v754_v60  ;;  %v745_v62 = vsub.f32 %v516_v9, %v729_v61 }
 0x4cd   :  { %v756_v63 = vmul.f32 1.442695, %v745_v62 }
 0x4ce   :  { %v732_v0 = vpop.xlane.xlu1 %731  ;;  %v735_v4 = vpop.xlane.xlu0 %734 }
 0x4cf   :  { %3353 = vpow2.f32 %v756_v63  ;;  %v746_v1 = vsub.f32 %v565_v19, %v732_v0  ;;  %v747_v22 = vsub.f32 %v3883_v21, %v735_v4 }
 0x4d1   :  { %v758_v2 = vmul.f32 1.442695, %v746_v1  ;;  %v760_v23 = vmul.f32 1.442695, %v747_v22 }
 0x4d3   :  { %3355 = vpow2.f32 %v758_v2 }
 0x4d5   :  { %v3906_v5 = vpop.eup %3351 }
 0x4d6   :  { %v741_v6 = vpop.xlane.xlu0 %740  ;;  %v738_v10 = vpop.xlane.xlu1 %737  ;;  %v772_v34 = vsel %vm328_vm9, %v3906_v5, 0.0 }
 0x4d7   :  { %v748_v11 = vsub.f32 %v663_v32, %v738_v10  ;;  %773 = vadd.xlane.f32.xlu1 %v772_v34  ;;  %v749_v24 = vsub.f32 %v3888_v35, %v741_v6 }
 0x4d9   :  { %v3910_v8 = vpop.eup %3353  ;;  %v762_v13 = vmul.f32 1.442695, %v748_v11  ;;  %v764_v25 = vmul.f32 1.442695, %v749_v24 }
 0x4da   :  { %v864_v9 = vpop.permute.xlu0 %863  ;;  %v775_v14 = vsel %vm328_vm9, %v3910_v8, 0.0  ;;  %v912_v26 = vpop.permute.xlu1 %911 }
 0x4db   :  { %v869_v15 = vsel %vm819_vm10, %v864_v9, 0  ;;  %776 = vadd.xlane.f32.xlu0 %v775_v14  ;;  %3357 = vpow2.f32 %v762_v13  ;;  %v917_v46 = vsel %vm819_vm10, %v912_v26, 0 }
 0x4dc   :  { %3054 = vmatpush3.bf16.msra.mxu0 %v869_v15  ;;  %3359 = vpow2.f32 %v760_v23 }
 0x4dd   :  { %3065 = vmatprep.subr.bf16.mxu0 %v3553_v57  ;;  %v3916_v16 = vpop.eup %3355  ;;  %3361 = vpow2.f32 %v764_v25 }
 0x4de   :  { %v778_v17 = vsel %vm328_vm9, %v3916_v16, 0.0  ;;  %v960_v27 = vpop.permute.xlu1 %959 }
 0x4df   :  { %779 = vadd.xlane.f32.xlu1 %v778_v17  ;;  %v965_v42 = vsel %vm819_vm10, %v960_v27, 0 }
 0x4e5   :  { %v3920_v18 = vpop.eup %3357 }
 0x4e6   :  { %v784_v19 = vsel %vm328_vm9, %v3920_v18, 0.0  ;;  %v3930_v31 = vpop.eup %3359 }
 0x4e7   :  { %785 = vadd.xlane.f32.xlu1 %v784_v19  ;;  %v3934_v36 = vpop.eup %3361 }
 0x4f1   :  { %1055 = vrot.lane.b32.xlu0 %v3814_v33, %s3559_s23  ;;  %v781_v33 = vsel %vm328_vm9, %v3930_v31, 0.0 }
 0x4f8   :  { %1103 = vrot.lane.b32.xlu1 %v3826_v41, %s3559_s23  ;;  %v787_v41 = vsel %vm328_vm9, %v3934_v36, 0.0 }
 0x50b   :  { %v771_v30 = vpop.xlane.xlu0 %770 }
 0x50c   :  { %3363 = vrcp.f32 %v771_v30 }
 0x50f   :  { %v768_v32 = vpop.xlane.xlu1 %767 }
 0x510   :  { %3365 = vrcp.f32 %v768_v32  ;;  %782 = vadd.xlane.f32.xlu0 %v781_v33 }
 0x513   :  { %v1008_v47 = vpop.permute.xlu1 %1007 }
 0x514   :  { %788 = vadd.xlane.f32.xlu0 %v787_v41  ;;  %v1013_v55 = vsel %vm819_vm10, %v1008_v47, 0 }
 0x516   :  { %v3364_v21 = vpop.eup %3363 }
 0x517   :  { %v799_v35 = vmul.f32 %v3364_v21, %v3348_v54 }
 0x519   :  { %v807_v37 = vpack.c.bf16 %v799_v35, %v799_v35 }
 0x51a   :  { %v3366_v39 = vpop.eup %3365 }
 0x51b   :  { %v798_v43 = vmul.f32 %v3366_v39, %v3900_v59  ;;  %3056 = vmatmul.mubr.msk.bf16.vlgmr.msra.gmra.mrb[16].mxu0 %vm328_vm9, %v807_v37 }
 0x51c   :  { %3066 = vmatpush3.bf16.msra.mxu0 %v965_v42  ;;  %3067 = vmatprep.mubr.msk.bf16.mxu0 %vm3554_vm8, %v3553_v57 }
 0x51d   :  { %v806_v45 = vpack.c.bf16 %v798_v43, %v798_v43  ;;  %3077 = vmatprep.subr.bf16.mxu0 %v3553_v57 }
 0x51f   :  { %3050 = vmatmul.mubr.msk.bf16.vlgmr.msra.gmra.mrb[20].mxu1 %vm328_vm9, %v806_v45 }
 0x520   :  { %3060 = vmatpush3.bf16.msra.mxu1 %v917_v46  ;;  %3061 = vmatprep.mubr.msk.bf16.mxu1 %vm3554_vm8, %v3553_v57 }
 0x521   :  { %3071 = vmatprep.subr.bf16.mxu1 %v3553_v57 }
 0x52a   :  { %1151 = vrot.lane.b32.xlu0 %v3824_v40, %s3559_s23 }
 0x564   :  { %v774_v48 = vpop.xlane.xlu1 %773 }
 0x565   :  { %3367 = vrcp.f32 %v774_v48  ;;  %v3987_v48 = vld [vmem:[%s4398_s3] sm:$0xff]  }
 0x568   :  { %v777_v49 = vpop.xlane.xlu0 %776 }
 0x569   :  { %3369 = vrcp.f32 %v777_v49 }
 0x56c   :  { %v780_v50 = vpop.xlane.xlu1 %779  ;;  %v1056_v28 = vpop.permute.xlu0 %1055 }
 0x56d   :  { %3371 = vrcp.f32 %v780_v50  ;;  %v1061_v60 = vsel %vm819_vm10, %v1056_v28, 0  ;;  %v3994_v50 = vld [vmem:[%s4398_s3 + $0x8] sm:$0xff]  }
 0x56f   :  { %v3368_v51 = vpop.eup %3367 }
 0x570   :  { %v800_v52 = vmul.f32 %v3368_v51, %v3906_v5 }
 0x572   :  { %v808_v53 = vpack.c.bf16 %v800_v52, %v800_v52 }
 0x573   :  { %v3370_v54 = vpop.eup %3369 }
 0x574   :  { %v801_v59 = vmul.f32 %v3370_v54, %v3910_v8  ;;  %3062 = vmatmul.mubr.msk.bf16.vlgmr.msra.gmra.mrb[24].mxu1 %vm328_vm9, %v808_v53  ;;  %v786_v40 = vpop.xlane.xlu1 %785 }
 0x575   :  { %3072 = vmatpush3.bf16.msra.mxu1 %v1013_v55  ;;  %3073 = vmatprep.mubr.msk.bf16.mxu1 %vm3554_vm8, %v3553_v57  ;;  %3373 = vrcp.f32 %v786_v40 }
 0x576   :  { %v809_v20 = vpack.c.bf16 %v801_v59, %v801_v59  ;;  %3083 = vmatprep.subr.bf16.mxu1 %v3553_v57 }
 0x577   :  { %v3372_v29 = vpop.eup %3371 }
 0x578   :  { %3068 = vmatmul.mubr.msk.bf16.vlgmr.msra.gmra.mrb[20].mxu0 %vm328_vm9, %v809_v20  ;;  %v802_v61 = vmul.f32 %v3372_v29, %v3916_v16  ;;  %v1104_v62 = vpop.permute.xlu1 %1103 }
 0x579   :  { %3078 = vmatpush3.bf16.msra.mxu0 %v1061_v60  ;;  %3079 = vmatprep.mubr.msk.bf16.mxu0 %vm3554_vm8, %v3553_v57  ;;  %v1109_v0 = vsel %vm819_vm10, %v1104_v62, 0 }
 0x57a   :  { %3089 = vmatprep.subr.bf16.mxu0 %v3553_v57  ;;  %v810_v63 = vpack.c.bf16 %v802_v61, %v802_v61 }
 0x57c   :  { %3074 = vmatmul.mubr.msk.bf16.vlgmr.msra.gmra.mrb[28].mxu1 %vm328_vm9, %v810_v63 }
 0x57d   :  { %3084 = vmatpush3.bf16.msra.mxu1 %v1109_v0  ;;  %3085 = vmatprep.mubr.msk.bf16.mxu1 %vm3554_vm8, %v3553_v57 }
 0x57e   :  { %3095 = vmatprep.subr.bf16.mxu1 %v3553_v57 }
 0x57f   :  { %v3374_v1 = vpop.eup %3373 }
 0x580   :  { %v804_v2 = vmul.f32 %v3374_v1, %v3920_v18 }
 0x582   :  { %v812_v4 = vpack.c.bf16 %v804_v2, %v804_v2 }
 0x584   :  { %3086 = vmatmul.mubr.msk.bf16.vlgmr.msra.gmra.mrb[32].mxu1 %vm328_vm9, %v812_v4 }
 0x585   :  { %3099 = vmatprep.mubr.msk.bf16.mxu1 %vm3554_vm8, %v3553_v57  ;;  %3096 = vmatpush3.bf16.msra.mxu1 %v3987_v48 }
 0x586   :  { %3097 = vmatprep.subr.bf16.mxu1 %v3553_v57 }
 0x589   :  { %3098 = vmatpush3.bf16.msra.mxu1 %v3994_v50 }
 0x58a   :  { %3111 = vmatprep.subr.bf16.mxu1 %v3553_v57 }
 0x59d   :  { %v783_v5 = vpop.xlane.xlu0 %782 }
 0x59e   :  { %3375 = vrcp.f32 %v783_v5 }
 0x5a1   :  { %v789_v6 = vpop.xlane.xlu0 %788 }
 0x5a2   :  { %3377 = vrcp.f32 %v789_v6 }
 0x5a5   :  { %v1152_v11 = vpop.permute.xlu0 %1151 }
 0x5a6   :  { %v1157_v9 = vsel %vm819_vm10, %v1152_v11, 0 }
 0x5a8   :  { %v3376_v10 = vpop.eup %3375 }
 0x5a9   :  { %v803_v34 = vmul.f32 %v3376_v10, %v3930_v31 }
 0x5ab   :  { %v811_v8 = vpack.c.bf16 %v803_v34, %v803_v34 }
 0x5ac   :  { %v3378_v13 = vpop.eup %3377 }
 0x5ad   :  { %3080 = vmatmul.mubr.msk.bf16.vlgmr.msra.gmra.mrb[24].mxu0 %vm328_vm9, %v811_v8  ;;  %v805_v14 = vmul.f32 %v3378_v13, %v3934_v36 }
 0x5ae   :  { %3090 = vmatpush3.bf16.msra.mxu0 %v1157_v9  ;;  %3091 = vmatprep.mubr.msk.bf16.mxu0 %vm3554_vm8, %v3553_v57  ;;  %v4012_v9 = vld [vmem:[%s4399_s4] ss:$0 sm:$0xff] }
 0x5af   :  { %3103 = vmatprep.subr.bf16.mxu0 %v3553_v57  ;;  %v813_v15 = vpack.c.bf16 %v805_v14, %v805_v14 }
 0x5b5   :  { %3092 = vmatmul.mubr.msk.bf16.vlgmr.msra.gmra.mrb[28].mxu0 %vm328_vm9, %v813_v15 }
 0x5b6   :  { %3107 = vmatprep.mubr.msk.bf16.mxu0 %vm3554_vm8, %v3553_v57 }
 0x5ee   :  { %v905_v16 = vpop.f32.mrb[16].mxu0 }
 0x5ef   :  { %v3057_v17 = vpop.f32.mrb[17].mxu0 }
 0x5f0   :  { %v908_v18 = vpop.f32.mrb[18].mxu0 }
 0x5f1   :  { %v3058_v19 = vpop.f32.mrb[19].mxu0 }
 0x5f2   :  { %v857_v22 = vpop.f32.mrb[20].mxu1 }
 0x5f3   :  { %v3051_v23 = vpop.f32.mrb[21].mxu1 }
 0x5f4   :  { %v860_v24 = vpop.f32.mrb[22].mxu1 }
 0x5f5   :  { %v3052_v25 = vpop.f32.mrb[23].mxu1 }
 0x647   :  { %v953_v26 = vpop.f32.mrb[24].mxu1 }
 0x648   :  { %v3063_v27 = vpop.f32.mrb[25].mxu1 }
 0x649   :  { %v956_v30 = vpop.f32.mrb[26].mxu1 }
 0x64a   :  { %v3064_v31 = vpop.f32.mrb[27].mxu1 }
 0x64b   :  { %v1001_v32 = vpop.f32.mrb[20].mxu0 }
 0x64c   :  { %v3288_v33 = vpack.i.bf16 %v1001_v32, %v953_v26  ;;  %v3069_v36 = vpop.f32.mrb[21].mxu0 }
 0x64d   :  { %v1004_v41 = vpop.f32.mrb[22].mxu0 }
 0x64e   :  { %v3070_v21 = vpop.f32.mrb[23].mxu0  ;;  %3289 = vrot.lane.b32.xlu1 %v3288_v33, %s3560_s7 }
 0x64f   :  { %v1049_v35 = vpop.f32.mrb[28].mxu1  ;;  %v4033_v21 = vld [vmem:[%s4404_s9] sm:$0xff]  }
 0x650   :  { %v3075_v37 = vpop.f32.mrb[29].mxu1  ;;  %3104 = vmatpush3.bf16.msra.mxu0 %v4033_v21 }
 0x651   :  { %v1052_v39 = vpop.f32.mrb[30].mxu1  ;;  %3105 = vmatprep.subr.bf16.mxu0 %v3553_v57 }
 0x652   :  { %v3076_v42 = vpop.f32.mrb[31].mxu1 }
 0x657   :  { %v1145_v43 = vpop.f32.mrb[32].mxu1 }
 0x658   :  { %v3087_v45 = vpop.f32.mrb[33].mxu1 }
 0x659   :  { %v1148_v46 = vpop.f32.mrb[34].mxu1 }
 0x65a   :  { %v3088_v47 = vpop.f32.mrb[35].mxu1 }
 0x680   :  { %v1097_v49 = vpop.f32.mrb[24].mxu0 }
 0x681   :  { %v3293_v51 = vpack.i.bf16 %v1097_v49, %v1049_v35  ;;  %v3081_v52 = vpop.f32.mrb[25].mxu0  ;;  %v4039_v35 = vld [vmem:[%s4404_s9 + $0x8] sm:$0xff]  }
 0x682   :  { %v1100_v53 = vpop.f32.mrb[26].mxu0  ;;  %3106 = vmatpush3.bf16.msra.mxu0 %v4039_v35 }
 0x683   :  { %v3082_v54 = vpop.f32.mrb[27].mxu0  ;;  %3294 = vrot.lane.b32.xlu0 %v3293_v51, %s3561_s29  ;;  %3123 = vmatprep.subr.bf16.mxu0 %v3553_v57  ;;  %v4044_v51 = vld [vmem:[#allocation7] ss:$0 sm:$0xff] }
 0x688   :  { %v1193_v55 = vpop.f32.mrb[28].mxu0 }
 0x689   :  { %v3298_v59 = vpack.i.bf16 %v1193_v55, %v1145_v43  ;;  %v3093_v28 = vpop.f32.mrb[29].mxu0  ;;  %v4047_v55 = vld [vmem:[#allocation8] ss:$0 sm:$0xff] }
 0x68a   :  { %v1196_v40 = vpop.f32.mrb[30].mxu0 }
 0x68b   :  { %v3094_v20 = vpop.f32.mrb[31].mxu0  ;;  %3299 = vrot.lane.b32.xlu1 %v3298_v59, %s3562_s8 }
 0x6c0   :  { %v3290_v29 = vpop.permute.xlu1 %3289 }
 0x6c1   :  { %v3292_v61 = vunpack.i.h.bf16 %v3290_v29  ;;  %v3291_v62 = vunpack.i.l.bf16 %v3290_v29  ;;  %v4062_v29 = vld [vmem:[%s4406_s11] sm:$0xff]  }
 0x6c3   :  { %v1224_v2 = vsel %vm328_vm9, %v905_v16, %v3292_v61  ;;  %v1223_v4 = vsel %vm328_vm9, %v857_v22, %v3291_v62  ;;  %v4090_v61 = vld [vmem:[%s4405_s10] ss:$0 sm:$0xff] }
 0x6f5   :  { %v3295_v60 = vpop.permute.xlu0 %3294 }
 0x6f6   :  { %v3297_v63 = vunpack.i.h.bf16 %v3295_v60  ;;  %v3296_v0 = vunpack.i.l.bf16 %v3295_v60  ;;  %v4082_v60 = vld [vmem:[%s4406_s11 + $0x18] sm:$0xff]  }
 0x6f8   :  { %v1227_v10 = vsel %vm1225_vm11, %v1224_v2, %v3297_v63  ;;  %v1226_v34 = vsel %vm1225_vm11, %v1223_v4, %v3296_v0 }
 0x6fd   :  { %v3300_v1 = vpop.permute.xlu1 %3299 }
 0x6fe   :  { %v3302_v5 = vunpack.i.h.bf16 %v3300_v1  ;;  %v3301_v6 = vunpack.i.l.bf16 %v3300_v1 }
 0x700   :  { %v1230_v11 = vsel %vm1228_vm12, %v1227_v10, %v3302_v5  ;;  %v1229_v8 = vsel %vm1228_vm12, %v1226_v34, %v3301_v6 }
 0x701   :  { %v1231_v13 = vpack.c.bf16 %v1230_v11, %v1229_v8 }
 0x703   :  { %3100 = vmatmul.mubr.msk.bf16.vlgmr.msra.gmra.mrb[36].mxu1 %vm190_vm7, %v1231_v13 }
 0x704   :  { %3119 = vmatprep.mubr.msk.bf16.mxu1 %vm3554_vm8, %v3553_v57  ;;  %3112 = vmatpush3.bf16.msra.mxu1 %v4062_v29 }
 0x705   :  { %3113 = vmatprep.subr.bf16.mxu1 %v3553_v57 }
 0x7d6   :  { %v1287_v14 = vpop.f32.mrb[36].mxu1 }
 0x7d7   :  { %v1288_v15 = vadd.f32 %v4012_v9, %v1287_v14  ;;  %v3101_v16 = vpop.f32.mrb[37].mxu1 }
 0x7d8   :  { %v1290_v17 = vpop.f32.mrb[38].mxu1 }
 0x7d9   :  { %v4016_v18 = vadd.f32 %v1288_v15, %v3742_v38  ;;  %v1291_v19 = vadd.f32 %v4012_v9, %v1290_v17  ;;  %v3102_v22 = vpop.f32.mrb[39].mxu1 }
 0x7db   :  { %v4020_v23 = vadd.f32 %v1291_v19, %v3751_v44  ;;  %v1296_v24 = vsel %vm190_vm7, %v4016_v18, 0.0 }
 0x7dc   :  { %1297 = vadd.xlane.f32.xlu0 %v1296_v24 }
 0x7dd   :  { %v1299_v25 = vsel %vm190_vm7, %v4020_v23, 0.0 }
 0x7de   :  { %1300 = vadd.xlane.f32.xlu1 %v1299_v25 }
 0x869   :  { %v1298_v26 = vpop.xlane.xlu0 %1297 }
 0x86a   :  { %v1302_v27 = vmul.f32 0.03125, %v1298_v26 }
 0x86b   :  { %v1301_v30 = vpop.xlane.xlu1 %1300 }
 0x86c   :  { %v1304_v38 = vsub.f32 %v4016_v18, %v1302_v27  ;;  %v1303_v31 = vmul.f32 0.03125, %v1301_v30 }
 0x86e   :  { %v1305_v32 = vsub.f32 %v4020_v23, %v1303_v31  ;;  %v1306_v33 = vmul.f32 %v1304_v38, %v1304_v38  ;;  %v4100_v31 = vld [vmem:[%s4407_s12] ss:$0 sm:$0xff]  ;;  %s3564_s12 = smov [#allocation10]  }
 0x870   :  { %v1308_v44 = vsel %vm190_vm7, %v1306_v33, 0.0  ;;  %v1307_v36 = vmul.f32 %v1305_v32, %v1305_v32 }
 0x871   :  { %1309 = vadd.xlane.f32.xlu0 %v1308_v44 }
 0x872   :  { %v1311_v41 = vsel %vm190_vm7, %v1307_v36, 0.0 }
 0x875   :  { %1312 = vadd.xlane.f32.xlu0 %v1311_v41 }
 0x8fe   :  { %v1310_v37 = vpop.xlane.xlu0 %1309 }
 0x8ff   :  { %v1314_v39 = vmul.f32 0.03125, %v1310_v37 }
 0x901   :  { %v1316_v42 = vadd.f32 1e-05, %v1314_v39 }
 0x902   :  { %v1313_v43 = vpop.xlane.xlu0 %1312 }
 0x903   :  { %3379 = vrsqrt.f32 %v1316_v42  ;;  %v1315_v45 = vmul.f32 0.03125, %v1313_v43 }
 0x905   :  { %v1317_v46 = vadd.f32 1e-05, %v1315_v45 }
 0x907   :  { %3381 = vrsqrt.f32 %v1317_v46 }
 0x90d   :  { %v3380_v47 = vpop.eup %3379 }
 0x90e   :  { %v1320_v49 = vmul.f32 %v3380_v47, %v1304_v38 }
 0x910   :  { %v1328_v53 = vmul.f32 %v4044_v51, %v1320_v49 }
 0x911   :  { %v3382_v52 = vpop.eup %3381 }
 0x912   :  { %v1321_v54 = vmul.f32 %v3382_v52, %v1305_v32  ;;  %v1336_v28 = vadd.f32 %v4047_v55, %v1328_v53 }
 0x914   :  { %v1329_v59 = vmul.f32 %v4044_v51, %v1321_v54 }
 0x916   :  { %v1337_v40 = vadd.f32 %v4047_v55, %v1329_v59 }
 0x918   :  { %v1338_v20 = vpack.c.bf16 %v1337_v40, %v1336_v28 }
 0x91a   :  { %3108 = vmatmul.mubr.msk.bf16.vlgmr.msra.gmra.mrb[32].mxu0 %vm190_vm7, %v1338_v20 }
 0x91b   :  { %3124 = vmatpush3.bf16.msra.mxu0 %v3762_v56  ;;  %3127 = vmatprep.mubr.msk.bf16.mxu0 %vm3554_vm8, %v3553_v57  ;;  %v4068_v56 = vld [vmem:[%s4406_s11 + $0x8] sm:$0xff]  }
 0x91c   :  { %3125 = vmatprep.subr.bf16.mxu0 %v3553_v57  ;;  %3114 = vmatpush3.bf16.msra.mxu1 %v4068_v56 }
 0x91d   :  { %3115 = vmatprep.subr.bf16.mxu1 %v3553_v57 }
 0x91f   :  { %3126 = vmatpush3.bf16.msra.mxu0 %v3770_v58  ;;  %v4075_v58 = vld [vmem:[%s4406_s11 + $0x10] sm:$0xff]  }
 0x920   :  { %3131 = vmatprep.subr.bf16.mxu0 %v3553_v57  ;;  %3116 = vmatpush3.bf16.msra.mxu1 %v4075_v58 }
 0x921   :  { %3117 = vmatprep.subr.bf16.mxu1 %v3553_v57 }
 0x924   :  { %3118 = vmatpush3.bf16.msra.mxu1 %v4082_v60 }
 0x925   :  { %3137 = vmatprep.subr.bf16.mxu1 %v3553_v57 }
 0x9ed   :  { %v1394_v62 = vpop.f32.mrb[32].mxu0 }
 0x9ee   :  { %v1395_v63 = vadd.f32 %v4090_v61, %v1394_v62  ;;  %v3109_v0 = vpop.f32.mrb[33].mxu0 }
 0x9ef   :  { %v1397_v1 = vpop.f32.mrb[34].mxu0 }
 0x9f0   :  { %v1403_v2 = vmul.f32 0.044715, %v1395_v63  ;;  %v1398_v4 = vadd.f32 %v4090_v61, %v1397_v1  ;;  %v3110_v5 = vpop.f32.mrb[35].mxu0  ;;  %v1401_v24 = vmul.f32 0.5, %v1395_v63 }
 0x9f2   :  { %v1405_v6 = vmul.f32 %v1403_v2, %v1395_v63  ;;  %v1404_v10 = vmul.f32 0.044715, %v1398_v4  ;;  %v1402_v25 = vmul.f32 0.5, %v1398_v4 }
 0x9f4   :  { %v1407_v34 = vmul.f32 %v1405_v6, %v1395_v63  ;;  %v1406_v11 = vmul.f32 %v1404_v10, %v1398_v4 }
 0x9f6   :  { %v1409_v8 = vadd.f32 %v1407_v34, %v1395_v63  ;;  %v1408_v13 = vmul.f32 %v1406_v11, %v1398_v4 }
 0x9f8   :  { %v1411_v14 = vmul.f32 0.7978846, %v1409_v8  ;;  %v1410_v15 = vadd.f32 %v1408_v13, %v1398_v4 }
 0x9fa   :  { %3383 = vtanh.f32 %v1411_v14  ;;  %v1412_v16 = vmul.f32 0.7978846, %v1410_v15 }
 0x9fc   :  { %3385 = vtanh.f32 %v1412_v16 }
 0xa04   :  { %v3384_v17 = vpop.eup %3383 }
 0xa05   :  { %v1415_v19 = vadd.f32 1.0, %v3384_v17 }
 0xa06   :  { %v3386_v22 = vpop.eup %3385 }
 0xa07   :  { %v1416_v26 = vadd.f32 1.0, %v3386_v22  ;;  %v1417_v27 = vmul.f32 %v1415_v19, %v1401_v24 }
 0xa09   :  { %v1418_v30 = vmul.f32 %v1416_v26, %v1402_v25 }
 0xa0b   :  { %v1419_v38 = vpack.c.bf16 %v1418_v30, %v1417_v27 }
 0xa0d   :  { %3120 = vmatmul.mubr.msk.bf16.vlgmr.msra.gmra.mrb[40].mxu1 %vm1450_vm13, %v1419_v38 }
 0xa0e   :  { %3139 = vmatprep.mubr.msk.bf16.mxu1 %vm3554_vm8, %v3553_v57 }
 0xae0   :  { %v1488_v32 = vpop.f32.mrb[40].mxu1 }
 0xae1   :  { %v1489_v33 = vadd.f32 %v4100_v31, %v1488_v32  ;;  %v3121_v44 = vpop.f32.mrb[41].mxu1 }
 0xae2   :  { %v1491_v36 = vpop.f32.mrb[42].mxu1 }
 0xae3   :  { %v4104_v41 = vadd.f32 %v1489_v33, %v4016_v18  ;;  %v1492_v37 = vadd.f32 %v4100_v31, %v1491_v36  ;;  %v3122_v39 = vpop.f32.mrb[43].mxu1 }
 0xae5   :  { %v4108_v42 = vadd.f32 %v1492_v37, %v4020_v23  ;;  %v1497_v43 = vsel %vm190_vm7, %v4104_v41, 0.0 }
 0xae6   :  { %1498 = vadd.xlane.f32.xlu0 %v1497_v43 }
 0xae7   :  { %v1500_v45 = vsel %vm190_vm7, %v4108_v42, 0.0 }
 0xae8   :  { %1501 = vadd.xlane.f32.xlu1 %v1500_v45 }
 0xb73   :  { %v1499_v46 = vpop.xlane.xlu0 %1498 }
 0xb74   :  { %v1503_v47 = vmul.f32 0.03125, %v1499_v46 }
 0xb75   :  { %v1502_v49 = vpop.xlane.xlu1 %1501 }
 0xb76   :  { %v1505_v18 = vsub.f32 %v4104_v41, %v1503_v47  ;;  %v1504_v52 = vmul.f32 0.03125, %v1502_v49 }
 0xb78   :  { %v1506_v53 = vsub.f32 %v4108_v42, %v1504_v52  ;;  %v1507_v54 = vmul.f32 %v1505_v18, %v1505_v18 }
 0xb7a   :  { %v1509_v23 = vsel %vm190_vm7, %v1507_v54, 0.0  ;;  %v1508_v59 = vmul.f32 %v1506_v53, %v1506_v53 }
 0xb7b   :  { %1510 = vadd.xlane.f32.xlu0 %v1509_v23 }
 0xb7c   :  { %v1512_v28 = vsel %vm190_vm7, %v1508_v59, 0.0 }
 0xb7d   :  { %1513 = vadd.xlane.f32.xlu1 %v1512_v28 }
 0xc08   :  { %v1511_v40 = vpop.xlane.xlu0 %1510 }
 0xc09   :  { %v1515_v20 = vmul.f32 0.03125, %v1511_v40 }
 0xc0a   :  { %v1514_v62 = vpop.xlane.xlu1 %1513 }
 0xc0b   :  { %v1517_v63 = vadd.f32 1e-05, %v1515_v20  ;;  %v1516_v0 = vmul.f32 0.03125, %v1514_v62 }
 0xc0d   :  { %3387 = vrsqrt.f32 %v1517_v63  ;;  %v1518_v1 = vadd.f32 1e-05, %v1516_v0 }
 0xc0f   :  { %3389 = vrsqrt.f32 %v1518_v1 }
 0xc17   :  { %v3388_v2 = vpop.eup %3387 }
 0xc18   :  { %v1521_v4 = vmul.f32 %v3388_v2, %v1505_v18 }
 0xc19   :  { %v3390_v5 = vpop.eup %3389 }
 0xc1a   :  { %v1523_v6 = vmul.f32 %v3779_v3, %v1521_v4  ;;  %v1522_v10 = vmul.f32 %v3390_v5, %v1506_v53 }
 0xc1c   :  { %v1524_v34 = vmul.f32 %v3779_v3, %v1522_v10  ;;  %v1525_v11 = vadd.f32 %v3782_v7, %v1523_v6 }
 0xc1e   :  { %v1526_v8 = vadd.f32 %v3782_v7, %v1524_v34 }
 0xc20   :  { %v1527_v13 = vpack.c.bf16 %v1526_v8, %v1525_v11 }
 0xc22   :  { %3128 = vmatmul.mubr.msk.bf16.vlgmr.msra.gmra.mrb[36].mxu0 %vm190_vm7, %v1527_v13 }
 0xc23   :  { %3133 = vmatprep.mubr.msk.bf16.mxu0 %vm3554_vm8, %v3553_v57 }
 0xcf5   :  { %v1565_v14 = vpop.f32.mrb[36].mxu0 }
 0xcf6   :  { %v3129_v15 = vpop.f32.mrb[37].mxu0  ;;  %v1566_v17 = vadd.f32 %v3793_v12, %v1565_v14 }
 0xcf7   :  { %v1568_v16 = vpop.f32.mrb[38].mxu0 }
 0xcf8   :  { %v1569_v19 = vadd.f32 %v3793_v12, %v1568_v16  ;;  %v3130_v22 = vpop.f32.mrb[39].mxu0  ;;  %v1592_v7 = vpack.c.bf16 %v1566_v17, %v1566_v17 }
 0xcfa   :  { %v3308_v24 = vpack.i.bf16 %v1569_v19, %v1566_v17  ;;  %v4129_v3 = vpack.c.bf16 %v1569_v19, %v1569_v19 }
 0xcfc   :  { %3309 = vrot.lane.b32.xlu1 %v3308_v24, %s3555_s19  ;;  %3304 = vrot.lane.b32.xlu0 %v3308_v24, %s3556_s21  ;;  %s2827_s19 = sshll.u32 %s3564_s12, 4  ;;  %s2828_s19 = int_to_ptr.vmem [resolvable:$true] %s2827_s19 }
 0xcfd   :  { %s3519_s21 = scalar_lea.vmem %s2828_s19, 256  ;;  %p3524_p5 = scmp.lt.s32.totalorder %s2828_s19, %s2828_s19 }
 0xcfe   :  { %p3520_p4 = scmp.ne.s32.totalorder %s2828_s19, %s3519_s21  ;;  %p3525_p6 = scmp.lt.s32.totalorder %s3519_s21, %s3519_s21 }
 0xd00   :  { %3314 = vrot.lane.b32.xlu1 %v3308_v24, %s3557_s22  ;;  %1650 = vrot.lane.b32.xlu0 %v4129_v3, %s3558_s2  ;;  %p3526_p7 = por %p3525_p6, %p3524_p5 }
 0xd02   :  { %p3527_p8 = pnand %p3526_p7, %p3520_p4 }
 0xd04   :  { %1601 = vrot.lane.b32.xlu1 %v1592_v7, %s3558_s2 }
 0xd6e   :  { %v3310_v25 = vpop.permute.xlu1 %3309  ;;  %v3305_v26 = vpop.permute.xlu0 %3304 }
 0xd6f   :  { %v3307_v27 = vunpack.i.h.bf16 %v3305_v26  ;;  %v3306_v12 = vunpack.i.l.bf16 %v3305_v26  ;;  %v3312_v30 = vunpack.i.h.bf16 %v3310_v25  ;;  %v3311_v38 = vunpack.i.l.bf16 %v3310_v25 }
 0xd71   :  { %v4135_v32 = vpack.c.bf16 %v3307_v27, %v3307_v27  ;;  %v4137_v33 = vpack.c.bf16 %v3306_v12, %v3306_v12  ;;  %v4144_v39 = vpack.c.bf16 %v3312_v30, %v3312_v30  ;;  %v4146_v43 = vpack.c.bf16 %v3311_v38, %v3311_v38 }
 0xd72   :  { %v3315_v44 = vpop.permute.xlu1 %3314  ;;  %v1651_v36 = vpop.permute.xlu0 %1650 }
 0xd73   :  { %v1656_v37 = vsel %vm328_vm9, %v1651_v36, 0  ;;  %1699 = vrot.lane.b32.xlu1 %v4137_v33, %s3558_s2  ;;  %1748 = vrot.lane.b32.xlu0 %v4135_v32, %s3558_s2  ;;  %v3317_v45 = vunpack.i.h.bf16 %v3315_v44  ;;  %v3316_v46 = vunpack.i.l.bf16 %v3315_v44 }
 0xd74   :  { %3138 = vmatpush3.bf16.xpose.msra.mxu1 %v1656_v37 }
 0xd75   :  { %3149 = vmatprep.subr.bf16.mxu1 %v3553_v57  ;;  %v4154_v18 = vpack.c.bf16 %v3317_v45, %v3317_v45  ;;  %v4156_v52 = vpack.c.bf16 %v3316_v46, %v3316_v46 }
 0xd76   :  { %v1602_v47 = vpop.permute.xlu1 %1601 }
 0xd77   :  { %v1607_v49 = vsel %vm328_vm9, %v1602_v47, 0  ;;  %1797 = vrot.lane.b32.xlu1 %v4146_v43, %s3558_s2  ;;  %1846 = vrot.lane.b32.xlu0 %v4144_v39, %s3558_s2 }
 0xd78   :  { %3132 = vmatpush3.bf16.xpose.msra.mxu0 %v1607_v49 }
 0xd79   :  { %3143 = vmatprep.subr.bf16.mxu0 %v3553_v57 }
 0xd7b   :  { %1895 = vrot.lane.b32.xlu1 %v4156_v52, %s3558_s2  ;;  %1944 = vrot.lane.b32.xlu0 %v4154_v18, %s3558_s2 }
 0xd7c   :  { %3140 = vmatmul.mubr.msk.bf16.vlgmr.msra.gmra.mrb[44].mxu1 %vm328_vm9, %v4129_v3 }
 0xd7d   :  { %3151 = vmatprep.mubr.msk.bf16.mxu1 %vm3554_vm8, %v3553_v57 }
 0xd7f   :  { %3134 = vmatmul.mubr.msk.bf16.vlgmr.msra.gmra.mrb[40].mxu0 %vm328_vm9, %v1592_v7  ;;  %2088 = vrot.lane.b32.xlu1 %v1592_v7, %s3559_s23 }
 0xd80   :  { %3145 = vmatprep.mubr.msk.bf16.mxu0 %vm3554_vm8, %v3553_v57 }
 0xde5   :  { %v1700_v53 = vpop.permute.xlu1 %1699  ;;  %v1749_v54 = vpop.permute.xlu0 %1748 }
 0xde6   :  { %v1705_v23 = vsel %vm328_vm9, %v1700_v53, 0  ;;  %v1754_v59 = vsel %vm328_vm9, %v1749_v54, 0 }
 0xde7   :  { %3144 = vmatpush3.bf16.xpose.msra.mxu0 %v1705_v23  ;;  %3150 = vmatpush3.bf16.xpose.msra.mxu1 %v1754_v59 }
 0xde8   :  { %3155 = vmatprep.subr.bf16.mxu0 %v3553_v57  ;;  %3161 = vmatprep.subr.bf16.mxu1 %v3553_v57 }
 0xde9   :  { %v1798_v28 = vpop.permute.xlu1 %1797  ;;  %v1847_v40 = vpop.permute.xlu0 %1846 }
 0xdea   :  { %v1803_v20 = vsel %vm328_vm9, %v1798_v28, 0  ;;  %v1852_v62 = vsel %vm328_vm9, %v1847_v40, 0 }
 0xded   :  { %v1896_v63 = vpop.permute.xlu1 %1895  ;;  %v1945_v0 = vpop.permute.xlu0 %1944 }
 0xdee   :  { %3146 = vmatmul.mubr.msk.bf16.vlgmr.msra.gmra.mrb[44].mxu0 %vm328_vm9, %v4137_v33  ;;  %3152 = vmatmul.mubr.msk.bf16.vlgmr.msra.gmra.mrb[48].mxu1 %vm328_vm9, %v4135_v32  ;;  %v1901_v1 = vsel %vm328_vm9, %v1896_v63, 0  ;;  %v1950_v2 = vsel %vm328_vm9, %v1945_v0, 0 }
 0xdef   :  { %3156 = vmatpush3.bf16.xpose.msra.mxu0 %v1803_v20  ;;  %3162 = vmatpush3.bf16.xpose.msra.mxu1 %v1852_v62 }
 0xdf0   :  { %3157 = vmatprep.mubr.msk.bf16.mxu0 %vm3554_vm8, %v3553_v57  ;;  %3163 = vmatprep.mubr.msk.bf16.mxu1 %vm3554_vm8, %v3553_v57 }
 0xdf1   :  { %3167 = vmatprep.subr.bf16.mxu0 %v3553_v57  ;;  %3173 = vmatprep.subr.bf16.mxu1 %v3553_v57  ;;  %v2089_v4 = vpop.permute.xlu1 %2088 }
 0xdf2   :  { %v2094_v5 = vsel %vm819_vm10, %v2089_v4, 0 }
 0xdf6   :  { %3158 = vmatmul.mubr.msk.bf16.vlgmr.msra.gmra.mrb[48].mxu0 %vm328_vm9, %v4146_v43  ;;  %3164 = vmatmul.mubr.msk.bf16.vlgmr.msra.gmra.mrb[52].mxu1 %vm328_vm9, %v4144_v39 }
 0xdf7   :  { %3168 = vmatpush3.bf16.xpose.msra.mxu0 %v1901_v1  ;;  %3174 = vmatpush3.bf16.xpose.msra.mxu1 %v1950_v2 }
 0xdf8   :  { %3169 = vmatprep.mubr.msk.bf16.mxu0 %vm3554_vm8, %v3553_v57  ;;  %3175 = vmatprep.mubr.msk.bf16.mxu1 %vm3554_vm8, %v3553_v57 }
 0xdf9   :  { %3179 = vmatprep.subr.bf16.mxu0 %v3553_v57  ;;  %3185 = vmatprep.subr.bf16.mxu1 %v3553_v57 }
 0xdfe   :  { %3170 = vmatmul.mubr.msk.bf16.vlgmr.msra.gmra.mrb[52].mxu0 %vm328_vm9, %v4156_v52  ;;  %3176 = vmatmul.mubr.msk.bf16.vlgmr.msra.gmra.mrb[56].mxu1 %vm328_vm9, %v4154_v18 }
 0xdff   :  { %3180 = vmatpush3.bf16.msra.mxu0 %v2094_v5  ;;  %3187 = vmatprep.mubr.msk.bf16.mxu1 %vm3554_vm8, %v3553_v57 }
 0xe00   :  { %3181 = vmatprep.mubr.msk.bf16.mxu0 %vm3554_vm8, %v3553_v57  ;;  %3191 = vmatprep.subr.bf16.mxu0 %v3553_v57 }
 0xe4f   :  { %v1692_v6 = vpop.f32.mrb[44].mxu1 }
 0xe50   :  { %v3141_v10 = vpop.f32.mrb[45].mxu1  ;;  %v1995_v34 = vsel %vm328_vm9, %v1692_v6, -inf }
 0xe51   :  { %1996 = vmax.xlane.f32.xlu0 %v1995_v34  ;;  %v1695_v11 = vpop.f32.mrb[46].mxu1 }
 0xe52   :  { %v3142_v8 = vpop.f32.mrb[47].mxu1  ;;  %v1643_v13 = vpop.f32.mrb[40].mxu0 }
 0xe53   :  { %v3135_v14 = vpop.f32.mrb[41].mxu0  ;;  %v1992_v15 = vsel %vm328_vm9, %v1643_v13, -inf }
 0xe54   :  { %1993 = vmax.xlane.f32.xlu1 %v1992_v15  ;;  %v1646_v16 = vpop.f32.mrb[42].mxu0 }
 0xe55   :  { %v3136_v17 = vpop.f32.mrb[43].mxu0 }
 0xec1   :  { %v1741_v19 = vpop.f32.mrb[44].mxu0  ;;  %v1790_v22 = vpop.f32.mrb[48].mxu1 }
 0xec2   :  { %v3147_v24 = vpop.f32.mrb[45].mxu0  ;;  %v3153_v7 = vpop.f32.mrb[49].mxu1  ;;  %v1998_v25 = vsel %vm328_vm9, %v1741_v19, -inf  ;;  %v2001_v38 = vsel %vm328_vm9, %v1790_v22, -inf }
 0xec3   :  { %v1744_v26 = vpop.f32.mrb[46].mxu0  ;;  %1999 = vmax.xlane.f32.xlu0 %v1998_v25  ;;  %v1793_v27 = vpop.f32.mrb[50].mxu1 }
 0xec4   :  { %v3148_v12 = vpop.f32.mrb[47].mxu0  ;;  %v3154_v30 = vpop.f32.mrb[51].mxu1 }
 0xec7   :  { %2002 = vmax.xlane.f32.xlu0 %v2001_v38 }
 0xec9   :  { %v1839_v44 = vpop.f32.mrb[48].mxu0  ;;  %v4213_v36 = vpop.f32.mrb[52].mxu1 }
 0xeca   :  { %v3159_v37 = vpop.f32.mrb[49].mxu0  ;;  %v3165_v45 = vpop.f32.mrb[53].mxu1  ;;  %v2004_v46 = vsel %vm328_vm9, %v1839_v44, -inf  ;;  %v2007_v47 = vsel %vm328_vm9, %v4213_v36, -inf }
 0xecb   :  { %2005 = vmax.xlane.f32.xlu1 %v2004_v46  ;;  %v1842_v49 = vpop.f32.mrb[50].mxu0  ;;  %2008 = vmax.xlane.f32.xlu0 %v2007_v47  ;;  %v1891_v53 = vpop.f32.mrb[54].mxu1 }
 0xecc   :  { %v3160_v54 = vpop.f32.mrb[51].mxu0  ;;  %v3166_v23 = vpop.f32.mrb[55].mxu1 }
 0xed1   :  { %v1937_v59 = vpop.f32.mrb[52].mxu0  ;;  %v4218_v28 = vpop.f32.mrb[56].mxu1 }
 0xed2   :  { %v3171_v40 = vpop.f32.mrb[53].mxu0  ;;  %v3177_v20 = vpop.f32.mrb[57].mxu1  ;;  %v2010_v62 = vsel %vm328_vm9, %v1937_v59, -inf  ;;  %v2013_v63 = vsel %vm328_vm9, %v4218_v28, -inf }
 0xed3   :  { %2011 = vmax.xlane.f32.xlu1 %v2010_v62  ;;  %v1940_v0 = vpop.f32.mrb[54].mxu0  ;;  %2014 = vmax.xlane.f32.xlu0 %v2013_v63  ;;  %v1989_v1 = vpop.f32.mrb[58].mxu1 }
 0xed4   :  { %v3172_v2 = vpop.f32.mrb[55].mxu0  ;;  %v3178_v4 = vpop.f32.mrb[59].mxu1 }
 0xede   :  { %v1997_v5 = vpop.xlane.xlu0 %1996 }
 0xedf   :  { %v2017_v10 = vsub.f32 %v1692_v6, %v1997_v5 }
 0xee1   :  { %v1994_v34 = vpop.xlane.xlu1 %1993  ;;  %v2026_v11 = vmul.f32 1.442695, %v2017_v10 }
 0xee2   :  { %v2016_v8 = vsub.f32 %v1643_v13, %v1994_v34 }
 0xee3   :  { %3391 = vpow2.f32 %v2026_v11 }
 0xee4   :  { %2184 = vrot.lane.b32.xlu1 %v4137_v33, %s3559_s23  ;;  %v2024_v14 = vmul.f32 1.442695, %v2016_v8 }
 0xee6   :  { %3393 = vpow2.f32 %v2024_v14 }
 0xee8   :  { %2232 = vrot.lane.b32.xlu1 %v4135_v32, %s3559_s23 }
 0xee9   :  { %2136 = vrot.lane.b32.xlu0 %v4129_v3, %s3559_s23 }
 0xeed   :  { %v3392_v15 = vpop.eup %3391 }
 0xeee   :  { %v2043_v16 = vsel %vm328_vm9, %v3392_v15, 0.0 }
 0xef0   :  { %v4230_v17 = vpop.eup %3393 }
 0xef1   :  { %v2040_v32 = vsel %vm328_vm9, %v4230_v17, 0.0 }
 0xf08   :  { %2044 = vadd.xlane.f32.xlu0 %v2043_v16 }
 0xf0c   :  { %2041 = vadd.xlane.f32.xlu1 %v2040_v32 }
 0xf1d   :  { %2280 = vrot.lane.b32.xlu1 %v4146_v43, %s3559_s23 }
 0xf50   :  { %v2000_v3 = vpop.xlane.xlu0 %1999 }
 0xf51   :  { %v2018_v33 = vsub.f32 %v1741_v19, %v2000_v3 }
 0xf53   :  { %v2028_v6 = vmul.f32 1.442695, %v2018_v33 }
 0xf54   :  { %v2003_v13 = vpop.xlane.xlu0 %2002 }
 0xf55   :  { %3395 = vpow2.f32 %v2028_v6  ;;  %v2019_v24 = vsub.f32 %v1790_v22, %v2003_v13 }
 0xf57   :  { %v2030_v7 = vmul.f32 1.442695, %v2019_v24 }
 0xf58   :  { %v2006_v25 = vpop.xlane.xlu1 %2005  ;;  %v2009_v12 = vpop.xlane.xlu0 %2008 }
 0xf59   :  { %3397 = vpow2.f32 %v2030_v7  ;;  %v2020_v26 = vsub.f32 %v1839_v44, %v2006_v25 }
 0xf5b   :  { %v2032_v27 = vmul.f32 1.442695, %v2020_v26 }
 0xf5d   :  { %3399 = vpow2.f32 %v2032_v27 }
 0xf5f   :  { %v4236_v30 = vpop.eup %3395 }
 0xf60   :  { %v2012_v38 = vpop.xlane.xlu1 %2011  ;;  %v2015_v37 = vpop.xlane.xlu0 %2014  ;;  %v2046_v43 = vsel %vm328_vm9, %v4236_v30, 0.0 }
 0xf61   :  { %v2022_v45 = vsub.f32 %v1937_v59, %v2012_v38  ;;  %2047 = vadd.xlane.f32.xlu1 %v2046_v43  ;;  %v2021_v59 = vsub.f32 %v4213_v36, %v2009_v12  ;;  %v2023_v20 = vsub.f32 %v4218_v28, %v2015_v37 }
 0xf63   :  { %v4240_v19 = vpop.eup %3397  ;;  %v2036_v46 = vmul.f32 1.442695, %v2022_v45  ;;  %v2034_v40 = vmul.f32 1.442695, %v2021_v59  ;;  %v2038_v62 = vmul.f32 1.442695, %v2023_v20 }
 0xf64   :  { %v2137_v22 = vpop.permute.xlu0 %2136  ;;  %v2049_v47 = vsel %vm328_vm9, %v4240_v19, 0.0  ;;  %v2185_v63 = vpop.permute.xlu1 %2184 }
 0xf65   :  { %3401 = vpow2.f32 %v2036_v46  ;;  %v2142_v44 = vsel %vm819_vm10, %v2137_v22, 0  ;;  %2050 = vadd.xlane.f32.xlu0 %v2049_v47  ;;  %v2190_v16 = vsel %vm819_vm10, %v2185_v63, 0 }
 0xf66   :  { %3186 = vmatpush3.bf16.msra.mxu1 %v2142_v44  ;;  %3403 = vpow2.f32 %v2034_v40 }
 0xf67   :  { %v4245_v49 = vpop.eup %3399  ;;  %3197 = vmatprep.subr.bf16.mxu1 %v3553_v57  ;;  %3405 = vpow2.f32 %v2038_v62 }
 0xf68   :  { %v2052_v53 = vsel %vm328_vm9, %v4245_v49, 0.0  ;;  %v2233_v0 = vpop.permute.xlu1 %2232 }
 0xf69   :  { %2053 = vadd.xlane.f32.xlu1 %v2052_v53  ;;  %v2238_v11 = vsel %vm819_vm10, %v2233_v0, 0 }
 0xf6f   :  { %v4250_v54 = vpop.eup %3401 }
 0xf70   :  { %v2058_v23 = vsel %vm328_vm9, %v4250_v54, 0.0  ;;  %v4260_v2 = vpop.eup %3403 }
 0xf71   :  { %2059 = vadd.xlane.f32.xlu1 %v2058_v23  ;;  %v4264_v5 = vpop.eup %3405 }
 0xf7b   :  { %2328 = vrot.lane.b32.xlu0 %v4144_v39, %s3559_s23  ;;  %v2055_v39 = vsel %vm328_vm9, %v4260_v2, 0.0 }
 0xf82   :  { %2376 = vrot.lane.b32.xlu1 %v4156_v52, %s3559_s23  ;;  %v2061_v52 = vsel %vm328_vm9, %v4264_v5, 0.0 }
 0xf95   :  { %v2045_v1 = vpop.xlane.xlu0 %2044 }
 0xf96   :  { %3407 = vrcp.f32 %v2045_v1 }
 0xf99   :  { %v2042_v4 = vpop.xlane.xlu1 %2041 }
 0xf9a   :  { %3409 = vrcp.f32 %v2042_v4  ;;  %2056 = vadd.xlane.f32.xlu0 %v2055_v39 }
 0xf9e   :  { %2062 = vadd.xlane.f32.xlu0 %v2061_v52 }
 0xfa0   :  { %v3408_v36 = vpop.eup %3407 }
 0xfa1   :  { %v2073_v28 = vmul.f32 %v3408_v36, %v3392_v15  ;;  %v2281_v15 = vpop.permute.xlu1 %2280 }
 0xfa2   :  { %v2286_v7 = vsel %vm819_vm10, %v2281_v15, 0 }
 0xfa3   :  { %v2081_v10 = vpack.c.bf16 %v2073_v28, %v2073_v28 }
 0xfa4   :  { %v3410_v34 = vpop.eup %3409 }
 0xfa5   :  { %v2072_v8 = vmul.f32 %v3410_v34, %v4230_v17  ;;  %3188 = vmatmul.mubr.msk.bf16.vlgmr.msra.gmra.mrb[60].mxu1 %vm328_vm9, %v2081_v10 }
 0xfa6   :  { %3198 = vmatpush3.bf16.msra.mxu1 %v2238_v11  ;;  %3199 = vmatprep.mubr.msk.bf16.mxu1 %vm3554_vm8, %v3553_v57 }
 0xfa7   :  { %v2080_v14 = vpack.c.bf16 %v2072_v8, %v2072_v8  ;;  %3209 = vmatprep.subr.bf16.mxu1 %v3553_v57 }
 0xfa9   :  { %3182 = vmatmul.mubr.msk.bf16.vlgmr.msra.gmra.mrb[56].mxu0 %vm328_vm9, %v2080_v14 }
 0xfaa   :  { %3192 = vmatpush3.bf16.msra.mxu0 %v2190_v16  ;;  %3193 = vmatprep.mubr.msk.bf16.mxu0 %vm3554_vm8, %v3553_v57 }
 0xfab   :  { %3203 = vmatprep.subr.bf16.mxu0 %v3553_v57 }
 0xfb4   :  { %2424 = vrot.lane.b32.xlu0 %v4154_v18, %s3559_s23 }
 0xfee   :  { %v2048_v17 = vpop.xlane.xlu1 %2047 }
 0xfef   :  { %3411 = vrcp.f32 %v2048_v17 }
 0xff2   :  { %v2051_v32 = vpop.xlane.xlu0 %2050 }
 0xff3   :  { %3413 = vrcp.f32 %v2051_v32 }
 0xff6   :  { %v2054_v3 = vpop.xlane.xlu1 %2053  ;;  %v2329_v18 = vpop.permute.xlu0 %2328 }
 0xff7   :  { %3415 = vrcp.f32 %v2054_v3  ;;  %v2334_v38 = vsel %vm819_vm10, %v2329_v18, 0 }
 0xff9   :  { %v3412_v33 = vpop.eup %3411 }
 0xffa   :  { %v2074_v6 = vmul.f32 %v3412_v33, %v4236_v30 }
 0xffc   :  { %v2082_v13 = vpack.c.bf16 %v2074_v6, %v2074_v6 }
 0xffd   :  { %v3414_v24 = vpop.eup %3413 }
 0xffe   :  { %v2075_v25 = vmul.f32 %v3414_v24, %v4240_v19  ;;  %3194 = vmatmul.mubr.msk.bf16.vlgmr.msra.gmra.mrb[60].mxu0 %vm328_vm9, %v2082_v13  ;;  %v2060_v26 = vpop.xlane.xlu1 %2059 }
 0xfff   :  { %3204 = vmatpush3.bf16.msra.mxu0 %v2286_v7  ;;  %3417 = vrcp.f32 %v2060_v26  ;;  %3205 = vmatprep.mubr.msk.bf16.mxu0 %vm3554_vm8, %v3553_v57 }
0x1000   :  { %v2083_v27 = vpack.c.bf16 %v2075_v25, %v2075_v25  ;;  %3215 = vmatprep.subr.bf16.mxu0 %v3553_v57 }
0x1001   :  { %v3416_v12 = vpop.eup %3415 }
0x1002   :  { %v2076_v30 = vmul.f32 %v3416_v12, %v4245_v49  ;;  %3200 = vmatmul.mubr.msk.bf16.vlgmr.msra.gmra.mrb[64].mxu1 %vm328_vm9, %v2083_v27  ;;  %v2377_v37 = vpop.permute.xlu1 %2376 }
0x1003   :  { %3210 = vmatpush3.bf16.msra.mxu1 %v2334_v38  ;;  %3211 = vmatprep.mubr.msk.bf16.mxu1 %vm3554_vm8, %v3553_v57  ;;  %v2382_v45 = vsel %vm819_vm10, %v2377_v37, 0 }
0x1004   :  { %v2084_v43 = vpack.c.bf16 %v2076_v30, %v2076_v30  ;;  %3221 = vmatprep.subr.bf16.mxu1 %v3553_v57 }
0x1006   :  { %3206 = vmatmul.mubr.msk.bf16.vlgmr.msra.gmra.mrb[64].mxu0 %vm328_vm9, %v2084_v43 }
0x1007   :  { %3216 = vmatpush3.bf16.msra.mxu0 %v2382_v45  ;;  %3217 = vmatprep.mubr.msk.bf16.mxu0 %vm3554_vm8, %v3553_v57 }
0x1008   :  { %3227 = vmatprep.subr.bf16.mxu0 %v3553_v57 }
0x1009   :  { %v3418_v19 = vpop.eup %3417 }
0x100a   :  { %v2078_v46 = vmul.f32 %v3418_v19, %v4250_v54 }
0x100c   :  { %v2086_v22 = vpack.c.bf16 %v2078_v46, %v2078_v46 }
0x100e   :  { %3218 = vmatmul.mubr.msk.bf16.vlgmr.msra.gmra.mrb[68].mxu0 %vm328_vm9, %v2086_v22 }
0x100f   :  { %3228 = vmatpush3.bf16.msra.mxu0 %v3987_v48  ;;  %3231 = vmatprep.mubr.msk.bf16.mxu0 %vm3554_vm8, %v3553_v57 }
0x1010   :  { %3229 = vmatprep.subr.bf16.mxu0 %v3553_v57 }
0x1013   :  { %3230 = vmatpush3.bf16.msra.mxu0 %v3994_v50 }
0x1014   :  { %3243 = vmatprep.subr.bf16.mxu0 %v3553_v57 }
0x1027   :  { %v2057_v47 = vpop.xlane.xlu0 %2056 }
0x1028   :  { %3419 = vrcp.f32 %v2057_v47 }
0x102b   :  { %v2063_v44 = vpop.xlane.xlu0 %2062 }
0x102c   :  { %3421 = vrcp.f32 %v2063_v44 }
0x102f   :  { %v2425_v54 = vpop.permute.xlu0 %2424 }
0x1030   :  { %v2430_v48 = vsel %vm819_vm10, %v2425_v54, 0 }
0x1032   :  { %v3420_v49 = vpop.eup %3419 }
0x1033   :  { %v2077_v53 = vmul.f32 %v3420_v49, %v4260_v2 }
0x1035   :  { %v2085_v23 = vpack.c.bf16 %v2077_v53, %v2077_v53 }
0x1036   :  { %v3422_v59 = vpop.eup %3421 }
0x1037   :  { %3212 = vmatmul.mubr.msk.bf16.vlgmr.msra.gmra.mrb[68].mxu1 %vm328_vm9, %v2085_v23  ;;  %v2079_v50 = vmul.f32 %v3422_v59, %v4264_v5 }
0x1038   :  { %3222 = vmatpush3.bf16.msra.mxu1 %v2430_v48  ;;  %3223 = vmatprep.mubr.msk.bf16.mxu1 %vm3554_vm8, %v3553_v57 }
0x1039   :  { %3235 = vmatprep.subr.bf16.mxu1 %v3553_v57  ;;  %v2087_v40 = vpack.c.bf16 %v2079_v50, %v2079_v50 }
0x103f   :  { %3224 = vmatmul.mubr.msk.bf16.vlgmr.msra.gmra.mrb[72].mxu1 %vm328_vm9, %v2087_v40 }
0x1040   :  { %3236 = vmatpush3.bf16.msra.mxu1 %v4033_v21  ;;  %3239 = vmatprep.mubr.msk.bf16.mxu1 %vm3554_vm8, %v3553_v57 }
0x1041   :  { %3237 = vmatprep.subr.bf16.mxu1 %v3553_v57 }
0x1044   :  { %3238 = vmatpush3.bf16.msra.mxu1 %v4039_v35 }
0x1078   :  { %v2178_v20 = vpop.f32.mrb[60].mxu1 }
0x1079   :  { %v3189_v62 = vpop.f32.mrb[61].mxu1 }
0x107a   :  { %v2181_v63 = vpop.f32.mrb[62].mxu1 }
0x107b   :  { %v3190_v0 = vpop.f32.mrb[63].mxu1 }
0x107c   :  { %v2130_v1 = vpop.f32.mrb[56].mxu0 }
0x107d   :  { %v3183_v2 = vpop.f32.mrb[57].mxu0 }
0x107e   :  { %v2133_v4 = vpop.f32.mrb[58].mxu0 }
0x107f   :  { %v3184_v39 = vpop.f32.mrb[59].mxu0 }
0x10d1   :  { %v2226_v5 = vpop.f32.mrb[60].mxu0 }
0x10d2   :  { %v3195_v52 = vpop.f32.mrb[61].mxu0 }
0x10d3   :  { %v2229_v36 = vpop.f32.mrb[62].mxu0 }
0x10d4   :  { %v3196_v28 = vpop.f32.mrb[63].mxu0 }
0x10d5   :  { %v2274_v21 = vpop.f32.mrb[64].mxu1 }
0x10d6   :  { %v3318_v10 = vpack.i.bf16 %v2274_v21, %v2226_v5  ;;  %v3201_v34 = vpop.f32.mrb[65].mxu1 }
0x10d7   :  { %v2277_v11 = vpop.f32.mrb[66].mxu1 }
0x10d8   :  { %3319 = vrot.lane.b32.xlu1 %v3318_v10, %s3560_s7  ;;  %v3202_v8 = vpop.f32.mrb[67].mxu1 }
0x10d9   :  { %v2322_v35 = vpop.f32.mrb[64].mxu0 }
0x10da   :  { %v3207_v14 = vpop.f32.mrb[65].mxu0 }
0x10db   :  { %v2325_v16 = vpop.f32.mrb[66].mxu0 }
0x10dc   :  { %v3208_v15 = vpop.f32.mrb[67].mxu0 }
0x10e1   :  { %v2418_v17 = vpop.f32.mrb[68].mxu0 }
0x10e2   :  { %v3219_v32 = vpop.f32.mrb[69].mxu0 }
0x10e3   :  { %v2421_v3 = vpop.f32.mrb[70].mxu0 }
0x10e4   :  { %v3220_v33 = vpop.f32.mrb[71].mxu0 }
0x110a   :  { %v2370_v6 = vpop.f32.mrb[68].mxu1 }
0x110b   :  { %v3323_v13 = vpack.i.bf16 %v2370_v6, %v2322_v35  ;;  %v3213_v24 = vpop.f32.mrb[69].mxu1 }
0x110c   :  { %v2373_v7 = vpop.f32.mrb[70].mxu1 }
0x110d   :  { %3324 = vrot.lane.b32.xlu0 %v3323_v13, %s3561_s29  ;;  %v3214_v25 = vpop.f32.mrb[71].mxu1 }
0x1112   :  { %v2466_v26 = vpop.f32.mrb[72].mxu1 }
0x1113   :  { %v3328_v18 = vpack.i.bf16 %v2466_v26, %v2418_v17  ;;  %v3225_v27 = vpop.f32.mrb[73].mxu1 }
0x1114   :  { %v2469_v12 = vpop.f32.mrb[74].mxu1 }
0x1115   :  { %3329 = vrot.lane.b32.xlu1 %v3328_v18, %s3562_s8  ;;  %v3226_v30 = vpop.f32.mrb[75].mxu1 }
0x114a   :  { %v3320_v38 = vpop.permute.xlu1 %3319 }
0x114b   :  { %v3322_v43 = vunpack.i.h.bf16 %v3320_v38  ;;  %v3321_v45 = vunpack.i.l.bf16 %v3320_v38 }
0x114d   :  { %v2497_v47 = vsel %vm328_vm9, %v2178_v20, %v3322_v43  ;;  %v2496_v44 = vsel %vm328_vm9, %v2130_v1, %v3321_v45 }
0x117f   :  { %v3325_v37 = vpop.permute.xlu0 %3324 }
0x1180   :  { %v3327_v19 = vunpack.i.h.bf16 %v3325_v37  ;;  %v3326_v46 = vunpack.i.l.bf16 %v3325_v37 }
0x1182   :  { %v2499_v54 = vsel %vm1225_vm11, %v2497_v47, %v3327_v19  ;;  %v2498_v23 = vsel %vm1225_vm11, %v2496_v44, %v3326_v46 }
0x1187   :  { %v3330_v22 = vpop.permute.xlu1 %3329 }
0x1188   :  { %v3332_v49 = vunpack.i.h.bf16 %v3330_v22  ;;  %v3331_v53 = vunpack.i.l.bf16 %v3330_v22 }
0x118a   :  { %v2501_v59 = vsel %vm1228_vm12, %v2499_v54, %v3332_v49  ;;  %v2500_v48 = vsel %vm1228_vm12, %v2498_v23, %v3331_v53 }
0x118b   :  { %v2502_v50 = vpack.c.bf16 %v2501_v59, %v2500_v48  ;;  %v3563_v59 = vmov 1966171168  }
0x118c   :  { %v2692_v48 = vunpack.c.l.s4 %v3563_v59 }
0x118d   :  { %3232 = vmatmul.mubr.msk.bf16.vlgmr.msra.gmra.mrb[72].mxu0 %vm190_vm7, %v2502_v50  ;;  %v2694_v50 = vlaneseq }
0x118e   :  { %3244 = vmatpush3.bf16.msra.mxu0 %v4062_v29  ;;  %3251 = vmatprep.mubr.msk.bf16.mxu0 %vm3554_vm8, %v3553_v57 }
0x118f   :  { %3245 = vmatprep.subr.bf16.mxu0 %v3553_v57 }
0x1192   :  { %3246 = vmatpush3.bf16.msra.mxu0 %v4068_v56 }
0x1193   :  { %3247 = vmatprep.subr.bf16.mxu0 %v3553_v57 }
0x1196   :  { %3248 = vmatpush3.bf16.msra.mxu0 %v4075_v58 }
0x1197   :  { %3249 = vmatprep.subr.bf16.mxu0 %v3553_v57 }
0x119a   :  { %3250 = vmatpush3.bf16.msra.mxu0 %v4082_v60 }
0x1260   :  { %v2540_v40 = vpop.f32.mrb[72].mxu0 }
0x1261   :  { %v2541_v20 = vadd.f32 %v4012_v9, %v2540_v40  ;;  %v3233_v62 = vpop.f32.mrb[73].mxu0  ;;  %v2693_v40 = vunpack.c.0.s8 %v2692_v48 }
0x1262   :  { %v2543_v29 = vpop.f32.mrb[74].mxu0 }
0x1263   :  { %v4341_v63 = vadd.f32 %v2541_v20, %v4104_v41  ;;  %v2544_v0 = vadd.f32 %v4012_v9, %v2543_v29  ;;  %v3234_v1 = vpop.f32.mrb[75].mxu0  ;;  %v2695_v20 = vshrl.u32 %v2694_v50, 7 }
0x1265   :  { %v4345_v56 = vadd.f32 %v2544_v0, %v4108_v42  ;;  %v2549_v58 = vsel %vm190_vm7, %v4341_v63, 0.0  ;;  %v2696_v0 = vsub.s32 %v2693_v40, %v2695_v20 }
0x1266   :  { %2550 = vadd.xlane.f32.xlu0 %v2549_v58 }
0x1267   :  { %v2552_v57 = vsel %vm190_vm7, %v4345_v56, 0.0 }
0x1268   :  { %2553 = vadd.xlane.f32.xlu1 %v2552_v57 }
0x12f3   :  { %v2551_v60 = vpop.xlane.xlu0 %2550 }
0x12f4   :  { %v2555_v2 = vmul.f32 0.03125, %v2551_v60 }
0x12f5   :  { %v2554_v4 = vpop.xlane.xlu1 %2553 }
0x12f6   :  { %v2557_v41 = vsub.f32 %v4341_v63, %v2555_v2  ;;  %v2556_v39 = vmul.f32 0.03125, %v2554_v4 }
0x12f8   :  { %v2558_v9 = vsub.f32 %v4345_v56, %v2556_v39  ;;  %v2559_v5 = vmul.f32 %v2557_v41, %v2557_v41 }
0x12fa   :  { %v2561_v42 = vsel %vm190_vm7, %v2559_v5, 0.0  ;;  %v2560_v52 = vmul.f32 %v2558_v9, %v2558_v9 }
0x12fb   :  { %2562 = vadd.xlane.f32.xlu0 %v2561_v42 }
0x12fc   :  { %v2564_v36 = vsel %vm190_vm7, %v2560_v52, 0.0 }
0x12ff   :  { %2565 = vadd.xlane.f32.xlu0 %v2564_v36 }
0x1388   :  { %v2563_v28 = vpop.xlane.xlu0 %2562 }
0x1389   :  { %v2567_v21 = vmul.f32 0.03125, %v2563_v28 }
0x138b   :  { %v2569_v10 = vadd.f32 1e-05, %v2567_v21 }
0x138c   :  { %v2566_v34 = vpop.xlane.xlu0 %2565 }
0x138d   :  { %3423 = vrsqrt.f32 %v2569_v10  ;;  %v2568_v11 = vmul.f32 0.03125, %v2566_v34 }
0x138f   :  { %v2570_v8 = vadd.f32 1e-05, %v2568_v11 }
0x1391   :  { %3425 = vrsqrt.f32 %v2570_v8 }
0x1397   :  { %v3424_v35 = vpop.eup %3423 }
0x1398   :  { %v2573_v14 = vmul.f32 %v3424_v35, %v2557_v41 }
0x139a   :  { %v2575_v15 = vmul.f32 %v4044_v51, %v2573_v14 }
0x139b   :  { %v3426_v16 = vpop.eup %3425 }
0x139c   :  { %v2574_v17 = vmul.f32 %v3426_v16, %v2558_v9  ;;  %v2577_v3 = vadd.f32 %v4047_v55, %v2575_v15 }
0x139e   :  { %v2576_v32 = vmul.f32 %v4044_v51, %v2574_v17 }
0x13a0   :  { %v2578_v33 = vadd.f32 %v4047_v55, %v2576_v32 }
0x13a2   :  { %v2579_v6 = vpack.c.bf16 %v2578_v33, %v2577_v3 }
0x13a4   :  { %3240 = vmatmul.mubr.msk.bf16.vlgmr.msra.gmra.mrb[76].mxu1 %vm190_vm7, %v2579_v6 }
0x1477   :  { %v2617_v13 = vpop.f32.mrb[76].mxu1 }
0x1478   :  { %v2618_v24 = vadd.f32 %v4090_v61, %v2617_v13  ;;  %v3241_v7 = vpop.f32.mrb[77].mxu1 }
0x1479   :  { %v2620_v25 = vpop.f32.mrb[78].mxu1 }
0x147a   :  { %v2626_v26 = vmul.f32 0.044715, %v2618_v24  ;;  %v2621_v18 = vadd.f32 %v4090_v61, %v2620_v25  ;;  %v3242_v27 = vpop.f32.mrb[79].mxu1  ;;  %v2624_v44 = vmul.f32 0.5, %v2618_v24 }
0x147c   :  { %v2628_v12 = vmul.f32 %v2626_v26, %v2618_v24  ;;  %v2627_v30 = vmul.f32 0.044715, %v2621_v18  ;;  %v2625_v49 = vmul.f32 0.5, %v2621_v18 }
0x147e   :  { %v2630_v38 = vmul.f32 %v2628_v12, %v2618_v24  ;;  %v2629_v51 = vmul.f32 %v2627_v30, %v2621_v18 }
0x1480   :  { %v2632_v37 = vadd.f32 %v2630_v38, %v2618_v24  ;;  %v2631_v43 = vmul.f32 %v2629_v51, %v2621_v18 }
0x1482   :  { %v2634_v45 = vmul.f32 0.7978846, %v2632_v37  ;;  %v2633_v55 = vadd.f32 %v2631_v43, %v2621_v18 }
0x1484   :  { %3427 = vtanh.f32 %v2634_v45  ;;  %v2635_v19 = vmul.f32 0.7978846, %v2633_v55 }
0x1486   :  { %3429 = vtanh.f32 %v2635_v19 }
0x148e   :  { %v3428_v46 = vpop.eup %3427 }
0x148f   :  { %v2638_v22 = vadd.f32 1.0, %v3428_v46 }
0x1490   :  { %v3430_v47 = vpop.eup %3429 }
0x1491   :  { %v2639_v53 = vadd.f32 1.0, %v3430_v47  ;;  %v2640_v54 = vmul.f32 %v2638_v22, %v2624_v44 }
0x1493   :  { %v2641_v61 = vmul.f32 %v2639_v53, %v2625_v49 }
0x1495   :  { %v2642_v23 = vpack.c.bf16 %v2641_v61, %v2640_v54 }
0x1497   :  { %3252 = vmatmul.mubr.msk.bf16.vlgmr.msra.gmra.mrb[76].mxu0 %vm1450_vm13, %v2642_v23 }
0x156a   :  { %v2680_v62 = vpop.f32.mrb[76].mxu0 }
0x156b   :  { %v2681_v29 = vadd.f32 %v4100_v31, %v2680_v62  ;;  %v3253_v1 = vpop.f32.mrb[77].mxu0 }
0x156c   :  { %v2683_v58 = vpop.f32.mrb[78].mxu0 }
0x156d   :  { %v2687_v57 = vadd.f32 %v2681_v29, %v4341_v63  ;;  %v2684_v60 = vadd.f32 %v4100_v31, %v2683_v58  ;;  %v3254_v2 = vpop.f32.mrb[79].mxu0 }
0x156f   :  { %v2690_v4 = vcombine.high %v2687_v57, %v2687_v57  ;;  %v2697_v41 = vrot.slane %v2687_v57, %v2696_v0  ;;  %v2688_v39 = vadd.f32 %v2684_v60, %v4345_v56 }
0x1571   :  { %v2704_v9 = vrot.slane %v2690_v4, %v2696_v0  ;;  %v2705_v5 = vcombine.high %v2697_v41, %v2697_v41  ;;  %v2713_v42 = vrot.slane %v2697_v41, %v2696_v0  ;;  %v2757_v52 = vcombine.high %v2688_v39, %v2688_v39 }
0x1572   :  { %v2764_v36 = vrot.slane %v2688_v39, %v2696_v0 }
0x1573   :  { %v2706_v28 = vcombine.high %v2704_v9, %v2704_v9  ;;  %v2720_v21 = vrot.slane %v2704_v9, %v2696_v0  ;;  %v2727_v10 = vrot.slane %v2705_v5, %v2696_v0  ;;  %v2735_v34 = vcombine.high %v2713_v42, %v2713_v42  ;;  %2748 = vst.msk [vmem:[#allocation10] sm:$0x1] %vm2747_vm14, %v2713_v42 }
0x1574   :  { %v2771_v63 = vrot.slane %v2757_v52, %v2696_v0  ;;  %v2772_v11 = vcombine.high %v2764_v36, %v2764_v36  ;;  %v2780_v31 = vrot.slane %v2764_v36, %v2696_v0 }
0x1575   :  { %v2734_v8 = vrot.slane %v2706_v28, %v2696_v0  ;;  %v2736_v35 = vcombine.high %v2720_v21, %v2720_v21  ;;  %v2737_v14 = vcombine.high %v2727_v10, %v2727_v10  ;;  %2749 = vst.msk [vmem:[#allocation10 + $0x2] sm:$0x1] %vm2747_vm14, %v2727_v10  ;;  %2750 = vst.msk [vmem:[#allocation10 + $0x4] sm:$0x1] %vm2747_vm14, %v2735_v34 }
0x1576   :  { %2752 = vst.msk [vmem:[#allocation10 + $0x8] sm:$0x1] %vm2747_vm14, %v2720_v21  ;;  %v2773_v56 = vcombine.high %v2771_v63, %v2771_v63  ;;  %v2787_v16 = vrot.slane %v2771_v63, %v2696_v0  ;;  %v2794_v15 = vrot.slane %v2772_v11, %v2696_v0  ;;  %v2802_v17 = vcombine.high %v2780_v31, %v2780_v31 }
0x1577   :  { %2814 = vst.msk [vmem:[#allocation10 + $0x1] sm:$0x1] %vm2747_vm14, %v2780_v31  ;;  %v2738_v32 = vcombine.high %v2734_v8, %v2734_v8  ;;  %2751 = vst.msk [vmem:[#allocation10 + $0x6] sm:$0x1] %vm2747_vm14, %v2737_v14 }
0x1578   :  { %2753 = vst.msk [vmem:[#allocation10 + $0xa] sm:$0x1] %vm2747_vm14, %v2734_v8  ;;  %2754 = vst.msk [vmem:[#allocation10 + $0xc] sm:$0x1] %vm2747_vm14, %v2736_v35  ;;  %v2801_v3 = vrot.slane %v2773_v56, %v2696_v0  ;;  %v2803_v33 = vcombine.high %v2787_v16, %v2787_v16  ;;  %v2804_v6 = vcombine.high %v2794_v15, %v2794_v15 }
0x1579   :  { %2815 = vst.msk [vmem:[#allocation10 + $0x3] sm:$0x1] %vm2747_vm14, %v2794_v15  ;;  %2816 = vst.msk [vmem:[#allocation10 + $0x5] sm:$0x1] %vm2747_vm14, %v2802_v17 }
0x157a   :  { %2818 = vst.msk [vmem:[#allocation10 + $0x9] sm:$0x1] %vm2747_vm14, %v2787_v16  ;;  %2755 = vst.msk [vmem:[#allocation10 + $0xe] sm:$0x1] %vm2747_vm14, %v2738_v32  ;;  %v2805_v13 = vcombine.high %v2801_v3, %v2801_v3 }
0x157b   :  { %2817 = vst.msk [vmem:[#allocation10 + $0x7] sm:$0x1] %vm2747_vm14, %v2804_v6  ;;  %2819 = vst.msk [vmem:[#allocation10 + $0xb] sm:$0x1] %vm2747_vm14, %v2801_v3 }
0x157c   :  { %2820 = vst.msk [vmem:[#allocation10 + $0xd] sm:$0x1] %vm2747_vm14, %v2803_v33  ;;  %2821 = vst.msk [vmem:[#allocation10 + $0xf] sm:$0x1] %vm2747_vm14, %v2805_v13 }
0x157d   :  { %3530 = shalt.err (!%p3527_p8)
}
0x157e   :  { %s3531_s23 = scalar_lea.hbm %s4408_s13, 256 }
0x157f   :  { %p3532_p9 = scmp.ne.s32.totalorder %s4408_s13, %s3531_s23  ;;  %p3535_p10 = scmp.lt.u32.totalorder %s3531_s23, %s4408_s13 }
0x1581   :  { %p3537_p11 = pnand %p3535_p10, %p3532_p9 }
0x1583   :  { %3540 = shalt.err (!%p3537_p11)
}
0x1584   :  { %s3565_s29 = smov 32   ;;  %s3566_s8 = smov 2  }
0x1585   :  { %2833 = dma.vmem_to_hbm [thread:$0]  %s2828_s19, 256, %s4408_s13, [#allocation4], %s3565_s29, %s3565_s29, %s3566_s8  }
0x1586   :  { %3547 = dma.done.wait [#allocation4], 256  }
0x1587   :  { %3548 = vsyncadd [#allocation4], 4294967040 }
0x1588   :  { %2837 = vsyncpa [#allocation3], 1 }
0x1589   :  { %2838 = vsyncpa [#allocation6], 1 }
0x158a   :  { %2839 = vsyncpa [#allocation9], 1 }
0x158b   :  { %2840 = vsyncpa [#allocation4], 1 }

</bundles_post_ra>
